<compile_context>
chip_gen: v6e
topology: v6e:2x2x1
jax: 0.10.0
libtpu: 0.0.40
codegen_flags: <defaults>
</compile_context>

<pallas_src>
import functools

import jax
import jax.numpy as jnp
from jax.experimental import pallas as pl
from jax.experimental.pallas import tpu as pltpu


# ----------------------------- fused Pallas kernel --------------------------

def _lenet_kernel(x2_ref, g1_ref, b1_ref, g2_ref, b2_ref,
                  sh1_ref, sw1_ref, sh2_ref, sw2_ref, sf_ref,
                  wf1_ref, bf1_ref, wf2_ref, bf2_ref, wf3_ref, bf3_ref,
                  logits_ref, feats_ref, *, batch):
    f32 = jnp.float32
    B = batch
    R1 = B * 32          # conv1 computed on the full 32-row grid per image
    L1 = 6 * 28          # conv1 lanes: (cout, out_col) blocked -> 168
    R2 = B * 14          # rows entering conv2 (full 14-row grid per image)
    L2 = 16 * 10         # conv2 lanes -> 160
    R3 = B * 5           # rows entering fc1

    def mm(a, b):
        return jnp.dot(a, b, preferred_element_type=f32)

    # ---- conv1 + ReLU: sum over the 5 kernel rows of Toeplitz matmuls ------
    c1 = mm(x2_ref[0:R1, :], g1_ref[0])
    for kh in range(1, 5):
        c1 = c1 + mm(x2_ref[kh:kh + R1, :], g1_ref[kh])
    c1 = jnp.maximum(c1 + b1_ref[...], 0.0)                       # (R1, 168)

    # ---- pool1: 2x2 window max, then exact stride-2 selection matmuls ------
    pm1 = jnp.maximum(
        jnp.maximum(c1[0:R1 - 1, 0:L1 - 1], c1[1:R1, 0:L1 - 1]),
        jnp.maximum(c1[0:R1 - 1, 1:L1],     c1[1:R1, 1:L1]))      # (R1-1, 167)
    a1 = mm(mm(sh1_ref[...], pm1), sw1_ref[...])                  # (R2+8, 84)

    # ---- conv2 + ReLU -------------------------------------------------------
    c2 = mm(a1[0:R2, :], g2_ref[0])
    for kh in range(1, 5):
        c2 = c2 + mm(a1[kh:kh + R2, :], g2_ref[kh])
    c2 = jnp.maximum(c2 + b2_ref[...], 0.0)                       # (R2, 160)

    # ---- pool2 --------------------------------------------------------------
    pm2 = jnp.maximum(
        jnp.maximum(c2[0:R2 - 1, 0:L2 - 1], c2[1:R2, 0:L2 - 1]),
        jnp.maximum(c2[0:R2 - 1, 1:L2],     c2[1:R2, 1:L2]))      # (R2-1, 159)
    a2 = mm(mm(sh2_ref[...], pm2), sw2_ref[...])                  # (R3+8, 80)

    # ---- fc1 + ReLU: accumulate over the 5 pooled rows per image, then
    #      gather one row per image with an exact selection matmul -----------
    h1 = mm(a2[0:R3, :], wf1_ref[0])
    for i in range(1, 5):
        h1 = h1 + mm(a2[i:i + R3, :], wf1_ref[i])
    h1 = jnp.maximum(h1 + bf1_ref[...], 0.0)                      # (R3, 128)
    feats = mm(sf_ref[...], h1)                                   # (B, 128)
    feats_ref[...] = feats

    # ---- fc2 + ReLU, fc3 (weights pre-padded to 128 lanes) ------------------
    h2 = jnp.maximum(mm(feats, wf2_ref[...]) + bf2_ref[...], 0.0)
    logits_ref[...] = mm(h2, wf3_ref[...]) + bf3_ref[...]


# ---------------------------- weight / input packing ------------------------

def _toeplitz_conv_weights(w, in_w, out_w):
    """w: (Cout, Cin, KH, KW) -> G: (KH, Cin*in_w, Cout*out_w) with
    G[kh, cin*in_w + m, cout*out_w + j] = w[cout, cin, kh, m - j] (0<=m-j<KW)."""
    _, cin, kh_, kw_ = w.shape
    cout = w.shape[0]
    m = jnp.arange(in_w)[:, None]
    j = jnp.arange(out_w)[None, :]
    tap = m - j
    valid = (tap >= 0) & (tap < kw_)
    tap = jnp.clip(tap, 0, kw_ - 1)
    wk = w[:, :, :, tap] * valid[None, None, None].astype(w.dtype)
    return jnp.transpose(wk, (2, 1, 3, 0, 4)).reshape(kh_, cin * in_w,
                                                      cout * out_w)


def _pool_row_select(batch, in_rows, out_rows, total_in, pad_rows=8):
    """S[b*out_rows + i, b*in_rows + 2*i] = 1; trailing pad rows are zero."""
    n_out = batch * out_rows + pad_rows
    r = jnp.arange(n_out)
    tgt = (r // out_rows) * in_rows + 2 * (r % out_rows)
    valid = r < batch * out_rows
    cols = jnp.arange(total_in)
    return ((cols[None, :] == tgt[:, None]) & valid[:, None]).astype(jnp.float32)


def _pool_col_select(n_ch, in_w, out_w, total_in):
    """S[c*in_w + 2*j, c*out_w + j] = 1."""
    c_out = jnp.arange(n_ch * out_w)
    tgt = (c_out // out_w) * in_w + 2 * (c_out % out_w)
    rows = jnp.arange(total_in)
    return (rows[:, None] == tgt[None, :]).astype(jnp.float32)


def init_params(key, in_channels=1, num_classes=10):
    """Deterministic init, PyTorch-style U(-1/sqrt(fan_in), 1/sqrt(fan_in))."""
    def uinit(k, shape, fan_in):
        bound = 1.0 / float(fan_in) ** 0.5
        return jax.random.uniform(k, shape, jnp.float32, -bound, bound)

    ks = jax.random.split(key, 10)
    p = {}
    p["conv1_w"] = uinit(ks[0], (6, in_channels, 5, 5), in_channels * 25)
    p["conv1_b"] = uinit(ks[1], (6,), in_channels * 25)
    p["conv2_w"] = uinit(ks[2], (16, 6, 5, 5), 6 * 25)
    p["conv2_b"] = uinit(ks[3], (16,), 6 * 25)
    p["fc1_w"] = uinit(ks[4], (120, 400), 400)
    p["fc1_b"] = uinit(ks[5], (120,), 400)
    p["fc2_w"] = uinit(ks[6], (84, 120), 120)
    p["fc2_b"] = uinit(ks[7], (84,), 120)
    p["fc3_w"] = uinit(ks[8], (num_classes, 84), 84)
    p["fc3_b"] = uinit(ks[9], (num_classes,), 84)
    return p


def prepare_params(p):
    """One-time repack of PyTorch-layout params into kernel-friendly layouts."""
    num_classes = p["fc3_w"].shape[0]
    packed = {}
    packed["g1"] = _toeplitz_conv_weights(p["conv1_w"], in_w=32, out_w=28)
    packed["g2"] = _toeplitz_conv_weights(p["conv2_w"], in_w=14, out_w=10)
    packed["b1"] = jnp.repeat(p["conv1_b"], 28)[None, :]            # (1, 168)
    packed["b2"] = jnp.repeat(p["conv2_b"], 10)[None, :]            # (1, 160)
    # fc1: Wfc1[i, cout*5 + j, n] = fc1_w[n, cout*25 + i*5 + j], padded to 128.
    wf1 = p["fc1_w"].reshape(120, 16, 5, 5).transpose(2, 1, 3, 0).reshape(5, 80, 120)
    packed["wf1"] = jnp.pad(wf1, ((0, 0), (0, 0), (0, 8)))          # (5, 80, 128)
    packed["bf1"] = jnp.pad(p["fc1_b"], (0, 8))[None, :]            # (1, 128)
    packed["wf2"] = jnp.zeros((128, 128), jnp.float32).at[:120, :84].set(
        p["fc2_w"].T)
    packed["bf2"] = jnp.pad(p["fc2_b"], (0, 128 - 84))[None, :]
    packed["wf3"] = jnp.zeros((128, 128), jnp.float32).at[:84, :num_classes].set(
        p["fc3_w"].T)
    packed["bf3"] = jnp.pad(p["fc3_b"], (0, 128 - num_classes))[None, :]
    return packed


# --------------------------------- forward ----------------------------------

def lenet_forward(packed, sX, tX=None, num_classes=10):
    x = sX if tX is None else jnp.concatenate([sX, tX], axis=0)
    B, cin, H, W = x.shape
    assert (H, W) == (32, 32), "LeNet (Linear(400,120)) expects 32x32 inputs"

    # Single API-boundary layout prep: NCHW -> rows=(b,h), lanes=(cin,w), +pad.
    x2 = jnp.transpose(x, (0, 2, 1, 3)).reshape(B * 32, cin * 32)
    x2 = jnp.pad(x2, ((0, 8), (0, 0)))

    # Batch-dependent exact 0/1 selection matrices (constant-folded under jit).
    sh1 = _pool_row_select(B, 32, 14, B * 32 - 1)
    sw1 = _pool_col_select(6, 28, 14, 6 * 28 - 1)
    sh2 = _pool_row_select(B, 14, 5, B * 14 - 1)
    sw2 = _pool_col_select(16, 10, 5, 16 * 10 - 1)
    sf = (jnp.arange(B * 5)[None, :] ==
          (jnp.arange(B) * 5)[:, None]).astype(jnp.float32)

    vmem = pl.BlockSpec(memory_space=pltpu.MemorySpace.VMEM)
    logits, feats = pl.pallas_call(
        functools.partial(_lenet_kernel, batch=B),
        out_shape=(jax.ShapeDtypeStruct((B, 128), jnp.float32),
                   jax.ShapeDtypeStruct((B, 128), jnp.float32)),
        in_specs=[vmem] * 16,
        out_specs=(vmem, vmem),
    )(x2, packed["g1"], packed["b1"], packed["g2"], packed["b2"],
      sh1, sw1, sh2, sw2, sf,
      packed["wf1"], packed["bf1"], packed["wf2"], packed["bf2"],
      packed["wf3"], packed["bf3"])

    Bs = sX.shape[0]
    sC = logits[:Bs, :num_classes]
    if tX is None:
        return sC
    sF = feats[:Bs, :120]
    tF = feats[Bs:, :120]
    return sC, sF, tF


if __name__ == "__main__":
    key = jax.random.PRNGKey(0)
    pkey, skey, tkey = jax.random.split(key, 3)
    params = init_params(pkey, in_channels=1, num_classes=10)
    packed = prepare_params(params)

    # LeNet's Linear(400, 120) implies 32x32 spatial input; small batch=2.
    sX = jax.random.normal(skey, (2, 1, 32, 32), jnp.float32)
    tX = jax.random.normal(tkey, (2, 1, 32, 32), jnp.float32)

    fwd = jax.jit(lenet_forward)
    sC_only = fwd(packed, sX)                     # tX=None branch
    sC, sF, tF = fwd(packed, sX, tX)              # full branch
    jax.block_until_ready((sC_only, sC, sF, tF))

    assert sC_only.shape == (2, 10)
    assert sC.shape == (2, 10) and sF.shape == (2, 120) and tF.shape == (2, 120)
    print("KERNEL_OK")
</pallas_src>

<mosaic_0001>
module attributes {stable_mosaic.version = 11 : i64} {
  func.func @_lenet_kernel(%arg0: memref<72x32xf32, #tpu.memory_space<vmem>>, %arg1: memref<5x32x168xf32, #tpu.memory_space<vmem>>, %arg2: memref<1x168xf32, #tpu.memory_space<vmem>>, %arg3: memref<5x84x160xf32, #tpu.memory_space<vmem>>, %arg4: memref<1x160xf32, #tpu.memory_space<vmem>>, %arg5: memref<36x63xf32, #tpu.memory_space<vmem>>, %arg6: memref<167x84xf32, #tpu.memory_space<vmem>>, %arg7: memref<18x27xf32, #tpu.memory_space<vmem>>, %arg8: memref<159x80xf32, #tpu.memory_space<vmem>>, %arg9: memref<2x10xf32, #tpu.memory_space<vmem>>, %arg10: memref<5x80x128xf32, #tpu.memory_space<vmem>>, %arg11: memref<1x128xf32, #tpu.memory_space<vmem>>, %arg12: memref<128x128xf32, #tpu.memory_space<vmem>>, %arg13: memref<1x128xf32, #tpu.memory_space<vmem>>, %arg14: memref<128x128xf32, #tpu.memory_space<vmem>>, %arg15: memref<1x128xf32, #tpu.memory_space<vmem>>, %arg16: memref<2x128xf32, #tpu.memory_space<vmem>>, %arg17: memref<2x128xf32, #tpu.memory_space<vmem>>) attributes {dimension_semantics = [], scalar_prefetch = 0 : i64, scratch_operands = 0 : i64, tpu.core_type = #tpu.core_type<tc>} {
    %c0 = arith.constant 0 : index
    %c0_0 = arith.constant 0 : index
    %0 = vector.load %arg0[%c0, %c0_0] : memref<72x32xf32, #tpu.memory_space<vmem>>, vector<64x32xf32>
    %c0_1 = arith.constant 0 : index
    %c0_2 = arith.constant 0 : index
    %c0_3 = arith.constant 0 : index
    %1 = vector.load %arg1[%c0_1, %c0_2, %c0_3] : memref<5x32x168xf32, #tpu.memory_space<vmem>>, vector<1x32x168xf32>
    %2 = vector.shape_cast %1 : vector<1x32x168xf32> to vector<32x168xf32>
    %cst = arith.constant dense<0.000000e+00> : vector<64x168xf32>
    %3 = tpu.matmul %0, %2, %cst {dimension_numbers = #tpu.dot_dimension_numbers<[1], [0], [0], [1], [0, 0, 1, 1], [], []>} : vector<64x32xf32>, vector<32x168xf32>, vector<64x168xf32> -> vector<64x168xf32>
    %c1 = arith.constant 1 : index
    %c0_4 = arith.constant 0 : index
    %4 = vector.load %arg0[%c1, %c0_4] : memref<72x32xf32, #tpu.memory_space<vmem>>, vector<64x32xf32>
    %c1_5 = arith.constant 1 : index
    %c0_6 = arith.constant 0 : index
    %c0_7 = arith.constant 0 : index
    %5 = vector.load %arg1[%c1_5, %c0_6, %c0_7] : memref<5x32x168xf32, #tpu.memory_space<vmem>>, vector<1x32x168xf32>
    %6 = vector.shape_cast %5 : vector<1x32x168xf32> to vector<32x168xf32>
    %cst_8 = arith.constant dense<0.000000e+00> : vector<64x168xf32>
    %7 = tpu.matmul %4, %6, %cst_8 {dimension_numbers = #tpu.dot_dimension_numbers<[1], [0], [0], [1], [0, 0, 1, 1], [], []>} : vector<64x32xf32>, vector<32x168xf32>, vector<64x168xf32> -> vector<64x168xf32>
    %8 = arith.addf %3, %7 : vector<64x168xf32>
    %c2 = arith.constant 2 : index
    %c0_9 = arith.constant 0 : index
    %9 = vector.load %arg0[%c2, %c0_9] : memref<72x32xf32, #tpu.memory_space<vmem>>, vector<64x32xf32>
    %c2_10 = arith.constant 2 : index
    %c0_11 = arith.constant 0 : index
    %c0_12 = arith.constant 0 : index
    %10 = vector.load %arg1[%c2_10, %c0_11, %c0_12] : memref<5x32x168xf32, #tpu.memory_space<vmem>>, vector<1x32x168xf32>
    %11 = vector.shape_cast %10 : vector<1x32x168xf32> to vector<32x168xf32>
    %cst_13 = arith.constant dense<0.000000e+00> : vector<64x168xf32>
    %12 = tpu.matmul %9, %11, %cst_13 {dimension_numbers = #tpu.dot_dimension_numbers<[1], [0], [0], [1], [0, 0, 1, 1], [], []>} : vector<64x32xf32>, vector<32x168xf32>, vector<64x168xf32> -> vector<64x168xf32>
    %13 = arith.addf %8, %12 : vector<64x168xf32>
    %c3 = arith.constant 3 : index
    %c0_14 = arith.constant 0 : index
    %14 = vector.load %arg0[%c3, %c0_14] : memref<72x32xf32, #tpu.memory_space<vmem>>, vector<64x32xf32>
    %c3_15 = arith.constant 3 : index
    %c0_16 = arith.constant 0 : index
    %c0_17 = arith.constant 0 : index
    %15 = vector.load %arg1[%c3_15, %c0_16, %c0_17] : memref<5x32x168xf32, #tpu.memory_space<vmem>>, vector<1x32x168xf32>
    %16 = vector.shape_cast %15 : vector<1x32x168xf32> to vector<32x168xf32>
    %cst_18 = arith.constant dense<0.000000e+00> : vector<64x168xf32>
    %17 = tpu.matmul %14, %16, %cst_18 {dimension_numbers = #tpu.dot_dimension_numbers<[1], [0], [0], [1], [0, 0, 1, 1], [], []>} : vector<64x32xf32>, vector<32x168xf32>, vector<64x168xf32> -> vector<64x168xf32>
    %18 = arith.addf %13, %17 : vector<64x168xf32>
    %c4 = arith.constant 4 : index
    %c0_19 = arith.constant 0 : index
    %19 = vector.load %arg0[%c4, %c0_19] : memref<72x32xf32, #tpu.memory_space<vmem>>, vector<64x32xf32>
    %c4_20 = arith.constant 4 : index
    %c0_21 = arith.constant 0 : index
    %c0_22 = arith.constant 0 : index
    %20 = vector.load %arg1[%c4_20, %c0_21, %c0_22] : memref<5x32x168xf32, #tpu.memory_space<vmem>>, vector<1x32x168xf32>
    %21 = vector.shape_cast %20 : vector<1x32x168xf32> to vector<32x168xf32>
    %cst_23 = arith.constant dense<0.000000e+00> : vector<64x168xf32>
    %22 = tpu.matmul %19, %21, %cst_23 {dimension_numbers = #tpu.dot_dimension_numbers<[1], [0], [0], [1], [0, 0, 1, 1], [], []>} : vector<64x32xf32>, vector<32x168xf32>, vector<64x168xf32> -> vector<64x168xf32>
    %23 = arith.addf %18, %22 : vector<64x168xf32>
    %c0_24 = arith.constant 0 : index
    %c0_25 = arith.constant 0 : index
    %24 = vector.load %arg2[%c0_24, %c0_25] : memref<1x168xf32, #tpu.memory_space<vmem>>, vector<1x168xf32>
    %25 = vector.broadcast %24 : vector<1x168xf32> to vector<64x168xf32>
    %26 = arith.addf %23, %25 : vector<64x168xf32>
    %cst_26 = arith.constant 0.000000e+00 : f32
    %27 = vector.broadcast %cst_26 : f32 to vector<64x168xf32>
    %28 = arith.maximumf %26, %27 : vector<64x168xf32>
    %29 = vector.extract_strided_slice %28 {offsets = [0, 0], sizes = [63, 167], strides = [1, 1]} : vector<64x168xf32> to vector<63x167xf32>
    %30 = vector.extract_strided_slice %28 {offsets = [1, 0], sizes = [63, 167], strides = [1, 1]} : vector<64x168xf32> to vector<63x167xf32>
    %31 = arith.maximumf %29, %30 : vector<63x167xf32>
    %32 = vector.extract_strided_slice %28 {offsets = [0, 1], sizes = [63, 167], strides = [1, 1]} : vector<64x168xf32> to vector<63x167xf32>
    %33 = vector.extract_strided_slice %28 {offsets = [1, 1], sizes = [63, 167], strides = [1, 1]} : vector<64x168xf32> to vector<63x167xf32>
    %34 = arith.maximumf %32, %33 : vector<63x167xf32>
    %35 = arith.maximumf %31, %34 : vector<63x167xf32>
    %c0_27 = arith.constant 0 : index
    %c0_28 = arith.constant 0 : index
    %36 = vector.load %arg5[%c0_27, %c0_28] : memref<36x63xf32, #tpu.memory_space<vmem>>, vector<36x63xf32>
    %cst_29 = arith.constant dense<0.000000e+00> : vector<36x167xf32>
    %37 = tpu.matmul %36, %35, %cst_29 {dimension_numbers = #tpu.dot_dimension_numbers<[1], [0], [0], [1], [0, 0, 1, 1], [], []>} : vector<36x63xf32>, vector<63x167xf32>, vector<36x167xf32> -> vector<36x167xf32>
    %c0_30 = arith.constant 0 : index
    %c0_31 = arith.constant 0 : index
    %38 = vector.load %arg6[%c0_30, %c0_31] : memref<167x84xf32, #tpu.memory_space<vmem>>, vector<167x84xf32>
    %cst_32 = arith.constant dense<0.000000e+00> : vector<36x84xf32>
    %39 = tpu.matmul %37, %38, %cst_32 {dimension_numbers = #tpu.dot_dimension_numbers<[1], [0], [0], [1], [0, 0, 1, 1], [], []>} : vector<36x167xf32>, vector<167x84xf32>, vector<36x84xf32> -> vector<36x84xf32>
    %40 = vector.extract_strided_slice %39 {offsets = [0, 0], sizes = [28, 84], strides = [1, 1]} : vector<36x84xf32> to vector<28x84xf32>
    %c0_33 = arith.constant 0 : index
    %c0_34 = arith.constant 0 : index
    %c0_35 = arith.constant 0 : index
    %41 = vector.load %arg3[%c0_33, %c0_34, %c0_35] : memref<5x84x160xf32, #tpu.memory_space<vmem>>, vector<1x84x160xf32>
    %42 = vector.shape_cast %41 : vector<1x84x160xf32> to vector<84x160xf32>
    %cst_36 = arith.constant dense<0.000000e+00> : vector<28x160xf32>
    %43 = tpu.matmul %40, %42, %cst_36 {dimension_numbers = #tpu.dot_dimension_numbers<[1], [0], [0], [1], [0, 0, 1, 1], [], []>} : vector<28x84xf32>, vector<84x160xf32>, vector<28x160xf32> -> vector<28x160xf32>
    %44 = vector.extract_strided_slice %39 {offsets = [1, 0], sizes = [28, 84], strides = [1, 1]} : vector<36x84xf32> to vector<28x84xf32>
    %c1_37 = arith.constant 1 : index
    %c0_38 = arith.constant 0 : index
    %c0_39 = arith.constant 0 : index
    %45 = vector.load %arg3[%c1_37, %c0_38, %c0_39] : memref<5x84x160xf32, #tpu.memory_space<vmem>>, vector<1x84x160xf32>
    %46 = vector.shape_cast %45 : vector<1x84x160xf32> to vector<84x160xf32>
    %cst_40 = arith.constant dense<0.000000e+00> : vector<28x160xf32>
    %47 = tpu.matmul %44, %46, %cst_40 {dimension_numbers = #tpu.dot_dimension_numbers<[1], [0], [0], [1], [0, 0, 1, 1], [], []>} : vector<28x84xf32>, vector<84x160xf32>, vector<28x160xf32> -> vector<28x160xf32>
    %48 = arith.addf %43, %47 : vector<28x160xf32>
    %49 = vector.extract_strided_slice %39 {offsets = [2, 0], sizes = [28, 84], strides = [1, 1]} : vector<36x84xf32> to vector<28x84xf32>
    %c2_41 = arith.constant 2 : index
    %c0_42 = arith.constant 0 : index
    %c0_43 = arith.constant 0 : index
    %50 = vector.load %arg3[%c2_41, %c0_42, %c0_43] : memref<5x84x160xf32, #tpu.memory_space<vmem>>, vector<1x84x160xf32>
    %51 = vector.shape_cast %50 : vector<1x84x160xf32> to vector<84x160xf32>
    %cst_44 = arith.constant dense<0.000000e+00> : vector<28x160xf32>
    %52 = tpu.matmul %49, %51, %cst_44 {dimension_numbers = #tpu.dot_dimension_numbers<[1], [0], [0], [1], [0, 0, 1, 1], [], []>} : vector<28x84xf32>, vector<84x160xf32>, vector<28x160xf32> -> vector<28x160xf32>
    %53 = arith.addf %48, %52 : vector<28x160xf32>
    %54 = vector.extract_strided_slice %39 {offsets = [3, 0], sizes = [28, 84], strides = [1, 1]} : vector<36x84xf32> to vector<28x84xf32>
    %c3_45 = arith.constant 3 : index
    %c0_46 = arith.constant 0 : index
    %c0_47 = arith.constant 0 : index
    %55 = vector.load %arg3[%c3_45, %c0_46, %c0_47] : memref<5x84x160xf32, #tpu.memory_space<vmem>>, vector<1x84x160xf32>
    %56 = vector.shape_cast %55 : vector<1x84x160xf32> to vector<84x160xf32>
    %cst_48 = arith.constant dense<0.000000e+00> : vector<28x160xf32>
    %57 = tpu.matmul %54, %56, %cst_48 {dimension_numbers = #tpu.dot_dimension_numbers<[1], [0], [0], [1], [0, 0, 1, 1], [], []>} : vector<28x84xf32>, vector<84x160xf32>, vector<28x160xf32> -> vector<28x160xf32>
    %58 = arith.addf %53, %57 : vector<28x160xf32>
    %59 = vector.extract_strided_slice %39 {offsets = [4, 0], sizes = [28, 84], strides = [1, 1]} : vector<36x84xf32> to vector<28x84xf32>
    %c4_49 = arith.constant 4 : index
    %c0_50 = arith.constant 0 : index
    %c0_51 = arith.constant 0 : index
    %60 = vector.load %arg3[%c4_49, %c0_50, %c0_51] : memref<5x84x160xf32, #tpu.memory_space<vmem>>, vector<1x84x160xf32>
    %61 = vector.shape_cast %60 : vector<1x84x160xf32> to vector<84x160xf32>
    %cst_52 = arith.constant dense<0.000000e+00> : vector<28x160xf32>
    %62 = tpu.matmul %59, %61, %cst_52 {dimension_numbers = #tpu.dot_dimension_numbers<[1], [0], [0], [1], [0, 0, 1, 1], [], []>} : vector<28x84xf32>, vector<84x160xf32>, vector<28x160xf32> -> vector<28x160xf32>
    %63 = arith.addf %58, %62 : vector<28x160xf32>
    %c0_53 = arith.constant 0 : index
    %c0_54 = arith.constant 0 : index
    %64 = vector.load %arg4[%c0_53, %c0_54] : memref<1x160xf32, #tpu.memory_space<vmem>>, vector<1x160xf32>
    %65 = vector.broadcast %64 : vector<1x160xf32> to vector<28x160xf32>
    %66 = arith.addf %63, %65 : vector<28x160xf32>
    %cst_55 = arith.constant 0.000000e+00 : f32
    %67 = vector.broadcast %cst_55 : f32 to vector<28x160xf32>
    %68 = arith.maximumf %66, %67 : vector<28x160xf32>
    %69 = vector.extract_strided_slice %68 {offsets = [0, 0], sizes = [27, 159], strides = [1, 1]} : vector<28x160xf32> to vector<27x159xf32>
    %70 = vector.extract_strided_slice %68 {offsets = [1, 0], sizes = [27, 159], strides = [1, 1]} : vector<28x160xf32> to vector<27x159xf32>
    %71 = arith.maximumf %69, %70 : vector<27x159xf32>
    %72 = vector.extract_strided_slice %68 {offsets = [0, 1], sizes = [27, 159], strides = [1, 1]} : vector<28x160xf32> to vector<27x159xf32>
    %73 = vector.extract_strided_slice %68 {offsets = [1, 1], sizes = [27, 159], strides = [1, 1]} : vector<28x160xf32> to vector<27x159xf32>
    %74 = arith.maximumf %72, %73 : vector<27x159xf32>
    %75 = arith.maximumf %71, %74 : vector<27x159xf32>
    %c0_56 = arith.constant 0 : index
    %c0_57 = arith.constant 0 : index
    %76 = vector.load %arg7[%c0_56, %c0_57] : memref<18x27xf32, #tpu.memory_space<vmem>>, vector<18x27xf32>
    %cst_58 = arith.constant dense<0.000000e+00> : vector<18x159xf32>
    %77 = tpu.matmul %76, %75, %cst_58 {dimension_numbers = #tpu.dot_dimension_numbers<[1], [0], [0], [1], [0, 0, 1, 1], [], []>} : vector<18x27xf32>, vector<27x159xf32>, vector<18x159xf32> -> vector<18x159xf32>
    %c0_59 = arith.constant 0 : index
    %c0_60 = arith.constant 0 : index
    %78 = vector.load %arg8[%c0_59, %c0_60] : memref<159x80xf32, #tpu.memory_space<vmem>>, vector<159x80xf32>
    %cst_61 = arith.constant dense<0.000000e+00> : vector<18x80xf32>
    %79 = tpu.matmul %77, %78, %cst_61 {dimension_numbers = #tpu.dot_dimension_numbers<[1], [0], [0], [1], [0, 0, 1, 1], [], []>} : vector<18x159xf32>, vector<159x80xf32>, vector<18x80xf32> -> vector<18x80xf32>
    %80 = vector.extract_strided_slice %79 {offsets = [0, 0], sizes = [10, 80], strides = [1, 1]} : vector<18x80xf32> to vector<10x80xf32>
    %c0_62 = arith.constant 0 : index
    %c0_63 = arith.constant 0 : index
    %c0_64 = arith.constant 0 : index
    %81 = vector.load %arg10[%c0_62, %c0_63, %c0_64] : memref<5x80x128xf32, #tpu.memory_space<vmem>>, vector<1x80x128xf32>
    %82 = vector.shape_cast %81 : vector<1x80x128xf32> to vector<80x128xf32>
    %cst_65 = arith.constant dense<0.000000e+00> : vector<10x128xf32>
    %83 = tpu.matmul %80, %82, %cst_65 {dimension_numbers = #tpu.dot_dimension_numbers<[1], [0], [0], [1], [0, 0, 1, 1], [], []>} : vector<10x80xf32>, vector<80x128xf32>, vector<10x128xf32> -> vector<10x128xf32>
    %84 = vector.extract_strided_slice %79 {offsets = [1, 0], sizes = [10, 80], strides = [1, 1]} : vector<18x80xf32> to vector<10x80xf32>
    %c1_66 = arith.constant 1 : index
    %c0_67 = arith.constant 0 : index
    %c0_68 = arith.constant 0 : index
    %85 = vector.load %arg10[%c1_66, %c0_67, %c0_68] : memref<5x80x128xf32, #tpu.memory_space<vmem>>, vector<1x80x128xf32>
    %86 = vector.shape_cast %85 : vector<1x80x128xf32> to vector<80x128xf32>
    %cst_69 = arith.constant dense<0.000000e+00> : vector<10x128xf32>
    %87 = tpu.matmul %84, %86, %cst_69 {dimension_numbers = #tpu.dot_dimension_numbers<[1], [0], [0], [1], [0, 0, 1, 1], [], []>} : vector<10x80xf32>, vector<80x128xf32>, vector<10x128xf32> -> vector<10x128xf32>
    %88 = arith.addf %83, %87 : vector<10x128xf32>
    %89 = vector.extract_strided_slice %79 {offsets = [2, 0], sizes = [10, 80], strides = [1, 1]} : vector<18x80xf32> to vector<10x80xf32>
    %c2_70 = arith.constant 2 : index
    %c0_71 = arith.constant 0 : index
    %c0_72 = arith.constant 0 : index
    %90 = vector.load %arg10[%c2_70, %c0_71, %c0_72] : memref<5x80x128xf32, #tpu.memory_space<vmem>>, vector<1x80x128xf32>
    %91 = vector.shape_cast %90 : vector<1x80x128xf32> to vector<80x128xf32>
    %cst_73 = arith.constant dense<0.000000e+00> : vector<10x128xf32>
    %92 = tpu.matmul %89, %91, %cst_73 {dimension_numbers = #tpu.dot_dimension_numbers<[1], [0], [0], [1], [0, 0, 1, 1], [], []>} : vector<10x80xf32>, vector<80x128xf32>, vector<10x128xf32> -> vector<10x128xf32>
    %93 = arith.addf %88, %92 : vector<10x128xf32>
    %94 = vector.extract_strided_slice %79 {offsets = [3, 0], sizes = [10, 80], strides = [1, 1]} : vector<18x80xf32> to vector<10x80xf32>
    %c3_74 = arith.constant 3 : index
    %c0_75 = arith.constant 0 : index
    %c0_76 = arith.constant 0 : index
    %95 = vector.load %arg10[%c3_74, %c0_75, %c0_76] : memref<5x80x128xf32, #tpu.memory_space<vmem>>, vector<1x80x128xf32>
    %96 = vector.shape_cast %95 : vector<1x80x128xf32> to vector<80x128xf32>
    %cst_77 = arith.constant dense<0.000000e+00> : vector<10x128xf32>
    %97 = tpu.matmul %94, %96, %cst_77 {dimension_numbers = #tpu.dot_dimension_numbers<[1], [0], [0], [1], [0, 0, 1, 1], [], []>} : vector<10x80xf32>, vector<80x128xf32>, vector<10x128xf32> -> vector<10x128xf32>
    %98 = arith.addf %93, %97 : vector<10x128xf32>
    %99 = vector.extract_strided_slice %79 {offsets = [4, 0], sizes = [10, 80], strides = [1, 1]} : vector<18x80xf32> to vector<10x80xf32>
    %c4_78 = arith.constant 4 : index
    %c0_79 = arith.constant 0 : index
    %c0_80 = arith.constant 0 : index
    %100 = vector.load %arg10[%c4_78, %c0_79, %c0_80] : memref<5x80x128xf32, #tpu.memory_space<vmem>>, vector<1x80x128xf32>
    %101 = vector.shape_cast %100 : vector<1x80x128xf32> to vector<80x128xf32>
    %cst_81 = arith.constant dense<0.000000e+00> : vector<10x128xf32>
    %102 = tpu.matmul %99, %101, %cst_81 {dimension_numbers = #tpu.dot_dimension_numbers<[1], [0], [0], [1], [0, 0, 1, 1], [], []>} : vector<10x80xf32>, vector<80x128xf32>, vector<10x128xf32> -> vector<10x128xf32>
    %103 = arith.addf %98, %102 : vector<10x128xf32>
    %c0_82 = arith.constant 0 : index
    %c0_83 = arith.constant 0 : index
    %104 = vector.load %arg11[%c0_82, %c0_83] : memref<1x128xf32, #tpu.memory_space<vmem>>, vector<1x128xf32>
    %105 = vector.broadcast %104 : vector<1x128xf32> to vector<10x128xf32>
    %106 = arith.addf %103, %105 : vector<10x128xf32>
    %cst_84 = arith.constant 0.000000e+00 : f32
    %107 = vector.broadcast %cst_84 : f32 to vector<10x128xf32>
    %108 = arith.maximumf %106, %107 : vector<10x128xf32>
    %c0_85 = arith.constant 0 : index
    %c0_86 = arith.constant 0 : index
    %109 = vector.load %arg9[%c0_85, %c0_86] : memref<2x10xf32, #tpu.memory_space<vmem>>, vector<2x10xf32>
    %cst_87 = arith.constant dense<0.000000e+00> : vector<2x128xf32>
    %110 = tpu.matmul %109, %108, %cst_87 {dimension_numbers = #tpu.dot_dimension_numbers<[1], [0], [0], [1], [0, 0, 1, 1], [], []>} : vector<2x10xf32>, vector<10x128xf32>, vector<2x128xf32> -> vector<2x128xf32>
    %c0_88 = arith.constant 0 : index
    %c0_89 = arith.constant 0 : index
    %111 = vector.load %arg17[%c0_88, %c0_89] : memref<2x128xf32, #tpu.memory_space<vmem>>, vector<2x128xf32>
    tpu.vector_store %arg17[%c0_88, %c0_89], %110 {strides = array<i32>} : memref<2x128xf32, #tpu.memory_space<vmem>>, vector<2x128xf32>,
    %c0_90 = arith.constant 0 : index
    %c0_91 = arith.constant 0 : index
    %112 = vector.load %arg12[%c0_90, %c0_91] : memref<128x128xf32, #tpu.memory_space<vmem>>, vector<128x128xf32>
    %cst_92 = arith.constant dense<0.000000e+00> : vector<2x128xf32>
    %113 = tpu.matmul %110, %112, %cst_92 {dimension_numbers = #tpu.dot_dimension_numbers<[1], [0], [0], [1], [0, 0, 1, 1], [], []>} : vector<2x128xf32>, vector<128x128xf32>, vector<2x128xf32> -> vector<2x128xf32>
    %c0_93 = arith.constant 0 : index
    %c0_94 = arith.constant 0 : index
    %114 = vector.load %arg13[%c0_93, %c0_94] : memref<1x128xf32, #tpu.memory_space<vmem>>, vector<1x128xf32>
    %115 = vector.broadcast %114 : vector<1x128xf32> to vector<2x128xf32>
    %116 = arith.addf %113, %115 : vector<2x128xf32>
    %cst_95 = arith.constant 0.000000e+00 : f32
    %117 = vector.broadcast %cst_95 : f32 to vector<2x128xf32>
    %118 = arith.maximumf %116, %117 : vector<2x128xf32>
    %c0_96 = arith.constant 0 : index
    %c0_97 = arith.constant 0 : index
    %119 = vector.load %arg14[%c0_96, %c0_97] : memref<128x128xf32, #tpu.memory_space<vmem>>, vector<128x128xf32>
    %cst_98 = arith.constant dense<0.000000e+00> : vector<2x128xf32>
    %120 = tpu.matmul %118, %119, %cst_98 {dimension_numbers = #tpu.dot_dimension_numbers<[1], [0], [0], [1], [0, 0, 1, 1], [], []>} : vector<2x128xf32>, vector<128x128xf32>, vector<2x128xf32> -> vector<2x128xf32>
    %c0_99 = arith.constant 0 : index
    %c0_100 = arith.constant 0 : index
    %121 = vector.load %arg15[%c0_99, %c0_100] : memref<1x128xf32, #tpu.memory_space<vmem>>, vector<1x128xf32>
    %122 = vector.broadcast %121 : vector<1x128xf32> to vector<2x128xf32>
    %123 = arith.addf %120, %122 : vector<2x128xf32>
    %c0_101 = arith.constant 0 : index
    %c0_102 = arith.constant 0 : index
    %124 = vector.load %arg16[%c0_101, %c0_102] : memref<2x128xf32, #tpu.memory_space<vmem>>, vector<2x128xf32>
    tpu.vector_store %arg16[%c0_101, %c0_102], %123 {strides = array<i32>} : memref<2x128xf32, #tpu.memory_space<vmem>>, vector<2x128xf32>,
    return
  }
}

</mosaic_0001>

<bundles_post_ra>
// kernel: lenet_forward.1
= control target key start
LH: loop header
LB: loop body
LE: loop exit
PB: predicated region body
PF: predicated region fallthrough
CT: control target
= control target key end

     0   :  { %s5396_s0 = inlined_call_operand.vmem [shape: f32[72,32], index: 0, kind: input, shape index: {}]   ;;  %s5397_s1 = inlined_call_operand.vmem [shape: f32[5,32,168], index: 1, kind: input, shape index: {}]   ;;  %s5398_s2 = inlined_call_operand.vmem [shape: f32[1,168], index: 2, kind: input, shape index: {}]   ;;  %s5399_s3 = inlined_call_operand.vmem [shape: f32[5,84,160], index: 3, kind: input, shape index: {}]   ;;  %s5400_s4 = inlined_call_operand.vmem [shape: f32[1,160], index: 4, kind: input, shape index: {}]   ;;  %s5401_s5 = inlined_call_operand.vmem [shape: f32[36,63], index: 5, kind: input, shape index: {}]   ;;  %s5402_s6 = inlined_call_operand.vmem [shape: f32[167,84], index: 6, kind: input, shape index: {}]   ;;  %s5403_s7 = inlined_call_operand.vmem [shape: f32[18,27], index: 7, kind: input, shape index: {}]   ;;  %s5404_s8 = inlined_call_operand.vmem [shape: f32[159,80], index: 8, kind: input, shape index: {}]   ;;  %s5405_s9 = inlined_call_operand.vmem [shape: f32[2,10], index: 9, kind: input, shape index: {}]   ;;  %s5406_s10 = inlined_call_operand.vmem [shape: f32[5,80,128], index: 10, kind: input, shape index: {}]   ;;  %s5407_s11 = inlined_call_operand.vmem [shape: f32[1,128], index: 11, kind: input, shape index: {}]   ;;  %s5408_s12 = inlined_call_operand.vmem [shape: f32[128,128], index: 12, kind: input, shape index: {}]   ;;  %s5409_s13 = inlined_call_operand.vmem [shape: f32[1,128], index: 13, kind: input, shape index: {}]   ;;  %s5410_s14 = inlined_call_operand.vmem [shape: f32[128,128], index: 14, kind: input, shape index: {}]   ;;  %s5411_s15 = inlined_call_operand.vmem [shape: f32[1,128], index: 15, kind: input, shape index: {}]   ;;  %s5412_s16 = inlined_call_operand.hbm [shape: f32[2,128], index: 16, kind: output, shape index: {0}]   ;;  %s5413_s17 = inlined_call_operand.hbm [shape: f32[2,128], index: 17, kind: output, shape index: {1}]  }
   0x1   :  { %5419 = sst [smem:[#allocation8_spill]] %s5396_s0 }
   0x2   :  { %5420 = sst [smem:[#allocation9_spill]] %s5397_s1 }
   0x3   :  { %23 = vsyncpa [#allocation3], 0  ;;  %s5421_s26 = sld [smem:[#allocation9_spill]]  ;;  %vm90_vm0 = vcmask 261120   ;;  %v5416_v18 = vmov 0.0  }
   0x4   :  { %s5422_s30 = sld [smem:[#allocation8_spill]]  ;;  %179 = vmatprep.mubr.f32.mxu0 %v5416_v18  ;;  %316 = vmatprep.mubr.f32.mxu1 %v5416_v18 }
   0x9   :  { %v3136_v0 = vld [vmem:[%s5421_s26 + $0x78] sm:$0xff]  ;;  %v3135_v2 = vld [vmem:[%s5421_s26 + $0x70] sm:$0xff]  ;;  %v3134_v4 = vld [vmem:[%s5421_s26 + $0x68] sm:$0xff] }
   0xa   :  { %v72_v1 = vld [vmem:[%s5421_s26 + $0x38] sm:$0xff]  ;;  %139 = vmatprep.subr.mxu0 %v3136_v0  ;;  %v71_v3 = vld [vmem:[%s5421_s26 + $0x30] sm:$0xff]  ;;  %v70_v5 = vld [vmem:[%s5421_s26 + $0x28] sm:$0xff] }
   0xb   :  { %276 = vmatprep.subr.mxu1 %v72_v1  ;;  %140 = vmatpush1.msra.mxu0 %v3135_v2  ;;  %v3133_v6 = vld [vmem:[%s5421_s26 + $0x60] sm:$0xff]  ;;  %v3132_v8 = vld [vmem:[%s5421_s26 + $0x58] sm:$0xff]  ;;  %v3131_v10 = vld [vmem:[%s5421_s26 + $0x50] sm:$0xff] }
   0xc   :  { %277 = vmatpush1.msra.mxu1 %v71_v3  ;;  %v69_v7 = vld [vmem:[%s5421_s26 + $0x20] sm:$0xff]  ;;  %141 = vmatprep.subr.mxu0 %v3134_v4  ;;  %v68_v9 = vld [vmem:[%s5421_s26 + $0x18] sm:$0xff]  ;;  %v67_v11 = vld [vmem:[%s5421_s26 + $0x10] sm:$0xff] }
   0xd   :  { %278 = vmatprep.subr.mxu1 %v70_v5  ;;  %142 = vmatpush1.msra.mxu0 %v3133_v6  ;;  %v3130_v12 = vld [vmem:[%s5421_s26 + $0x48] sm:$0xff]  ;;  %v3129_v14 = vld [vmem:[%s5421_s26 + $0x40] sm:$0xff]  ;;  %v3160_v19 = vld [vmem:[%s5421_s26 + $0xb8] sm:$0xff] }
   0xe   :  { %279 = vmatpush1.msra.mxu1 %v69_v7  ;;  %v66_v13 = vld [vmem:[%s5421_s26 + $0x8] sm:$0xff]  ;;  %143 = vmatprep.subr.mxu0 %v3132_v8  ;;  %v65_v15 = vld [vmem:[%s5421_s26] sm:$0xff]  ;;  %v3159_v21 = vld [vmem:[%s5421_s26 + $0xb0] sm:$0xff] }
   0xf   :  { %280 = vmatprep.subr.mxu1 %v68_v9  ;;  %144 = vmatpush1.msra.mxu0 %v3131_v10  ;;  %v73_v16 = vld [vmem:[%s5422_s30 + $0x1] sm:$0xff]  ;;  %v74_v20 = vld [vmem:[%s5422_s30 + $0x9] sm:$0xff]  ;;  %v3176_v23 = vld [vmem:[%s5421_s26 + $0xf8] sm:$0xff] }
  0x10   :  { %281 = vmatpush1.msra.mxu1 %v67_v11  ;;  %145 = vmatprep.subr.mxu0 %v3130_v12  ;;  %v57_v17 = vld [vmem:[%s5422_s30] sm:$0xff]  ;;  %v58_v22 = vld [vmem:[%s5422_s30 + $0x8] sm:$0xff]  ;;  %v3175_v24 = vld [vmem:[%s5421_s26 + $0xf0] sm:$0xff] }
  0x11   :  { %282 = vmatprep.subr.mxu1 %v66_v13  ;;  %146 = vmatpush1.msra.mxu0 %v3129_v14  ;;  %v3158_v25 = vld [vmem:[%s5421_s26 + $0xa8] sm:$0xff]  ;;  %v3157_v27 = vld [vmem:[%s5421_s26 + $0xa0] sm:$0xff]  ;;  %v75_v29 = vld [vmem:[%s5422_s30 + $0x11] sm:$0xff] }
  0x12   :  { %283 = vmatpush1.msra.mxu1 %v65_v15  ;;  %3137 = vmatmul.mubr.msk.f32.vlgmr.msra.gmra.mxu0 %vm90_vm0, %v73_v16  ;;  %v3174_v26 = vld [vmem:[%s5421_s26 + $0xe8] sm:$0xff]  ;;  %v3173_v28 = vld [vmem:[%s5421_s26 + $0xe0] sm:$0xff]  ;;  %v59_v30 = vld [vmem:[%s5422_s30 + $0x10] sm:$0xff] }
  0x13   :  { %3145 = vmatmul.mubr.msk.f32.vlgmr.msra.gmra.mxu1 %vm90_vm0, %v57_v17  ;;  %185 = vmatprep.mubr.f32.mxu0 %v5416_v18  ;;  %v3156_v31 = vld [vmem:[%s5421_s26 + $0x98] sm:$0xff]  ;;  %v3155_v33 = vld [vmem:[%s5421_s26 + $0x90] sm:$0xff]  ;;  %v3154_v37 = vld [vmem:[%s5421_s26 + $0x88] sm:$0xff] }
  0x14   :  { %322 = vmatprep.mubr.f32.mxu1 %v5416_v18  ;;  %430 = vmatprep.subr.mxu0 %v3160_v19  ;;  %v3172_v32 = vld [vmem:[%s5421_s26 + $0xd8] sm:$0xff]  ;;  %v3171_v34 = vld [vmem:[%s5421_s26 + $0xd0] sm:$0xff]  ;;  %v3170_v38 = vld [vmem:[%s5421_s26 + $0xc8] sm:$0xff] }
  0x15   :  { %600 = vmatprep.subr.mxu1 %v3176_v23  ;;  %431 = vmatpush1.msra.mxu0 %v3159_v21  ;;  %v76_v35 = vld [vmem:[%s5422_s30 + $0x19] sm:$0xff]  ;;  %v77_v41 = vld [vmem:[%s5422_s30 + $0x21] sm:$0xff] }
  0x16   :  { %601 = vmatpush1.msra.mxu1 %v3175_v24  ;;  %3138 = vmatmul.mubr.msk.f32.gmra.mxu0 %vm90_vm0, %v74_v20  ;;  %v60_v36 = vld [vmem:[%s5422_s30 + $0x18] sm:$0xff]  ;;  %v3153_v39 = vld [vmem:[%s5421_s26 + $0x80] sm:$0xff] }
  0x17   :  { %3146 = vmatmul.mubr.msk.f32.gmra.mxu1 %vm90_vm0, %v58_v22  ;;  %191 = vmatprep.mubr.f32.mxu0 %v5416_v18  ;;  %v3169_v40 = vld [vmem:[%s5421_s26 + $0xc0] sm:$0xff]  ;;  %v3192_v43 = vld [vmem:[%s5421_s26 + $0x138] sm:$0xff] }
  0x18   :  { %328 = vmatprep.mubr.f32.mxu1 %v5416_v18  ;;  %432 = vmatprep.subr.mxu0 %v3158_v25  ;;  %v61_v42 = vld [vmem:[%s5422_s30 + $0x20] sm:$0xff] }
  0x19   :  { %602 = vmatprep.subr.mxu1 %v3174_v26  ;;  %433 = vmatpush1.msra.mxu0 %v3157_v27 }
  0x1a   :  { %603 = vmatpush1.msra.mxu1 %v3173_v28  ;;  %3139 = vmatmul.mubr.msk.f32.gmra.mxu0 %vm90_vm0, %v75_v29 }
  0x1b   :  { %3147 = vmatmul.mubr.msk.f32.gmra.mxu1 %vm90_vm0, %v59_v30  ;;  %197 = vmatprep.mubr.f32.mxu0 %v5416_v18 }
  0x1c   :  { %334 = vmatprep.mubr.f32.mxu1 %v5416_v18  ;;  %434 = vmatprep.subr.mxu0 %v3156_v31 }
  0x1d   :  { %604 = vmatprep.subr.mxu1 %v3172_v32  ;;  %435 = vmatpush1.msra.mxu0 %v3155_v33 }
  0x1e   :  { %605 = vmatpush1.msra.mxu1 %v3171_v34  ;;  %3140 = vmatmul.mubr.msk.f32.gmra.mxu0 %vm90_vm0, %v76_v35 }
  0x1f   :  { %3148 = vmatmul.mubr.msk.f32.gmra.mxu1 %vm90_vm0, %v60_v36  ;;  %203 = vmatprep.mubr.f32.mxu0 %v5416_v18 }
  0x20   :  { %340 = vmatprep.mubr.f32.mxu1 %v5416_v18  ;;  %436 = vmatprep.subr.mxu0 %v3154_v37 }
  0x21   :  { %606 = vmatprep.subr.mxu1 %v3170_v38  ;;  %437 = vmatpush1.msra.mxu0 %v3153_v39 }
  0x22   :  { %607 = vmatpush1.msra.mxu1 %v3169_v40  ;;  %3141 = vmatmul.mubr.msk.f32.gmra.mxu0 %vm90_vm0, %v77_v41 }
  0x23   :  { %3149 = vmatmul.mubr.msk.f32.gmra.mxu1 %vm90_vm0, %v61_v42 }
  0x24   :  { %24 = vsyncpa [#allocation5], 0  ;;  %209 = vmatprep.mubr.f32.mxu0 %v5416_v18  ;;  %346 = vmatprep.mubr.f32.mxu1 %v5416_v18  ;;  %v78_v44 = vld [vmem:[%s5422_s30 + $0x29] sm:$0xff]  ;;  %v79_v46 = vld [vmem:[%s5422_s30 + $0x31] sm:$0xff]  ;;  %vm935_vm1 = vcmask 1046528   ;;  %vm1046_vm2 = vcmask 1039360  }
  0x25   :  { %v62_v45 = vld [vmem:[%s5422_s30 + $0x28] sm:$0xff]  ;;  %770 = vmatprep.subr.mxu0 %v3192_v43  ;;  %v63_v47 = vld [vmem:[%s5422_s30 + $0x30] sm:$0xff]  ;;  %v80_v48 = vld [vmem:[%s5422_s30 + $0x39] sm:$0xff]  ;;  %vm1092_vm3 = vcmask 515072   ;;  %vm1403_vm4 = vcmask 1043456   ;;  %vm1230_vm5 = vcmask 318464  }
  0x26   :  { %3142 = vmatmul.mubr.msk.f32.gmra.mxu0 %vm90_vm0, %v78_v44  ;;  %v64_v49 = vld [vmem:[%s5422_s30 + $0x38] sm:$0xff]  ;;  %v365_v50 = vld [vmem:[%s5422_s30 + $0x2] sm:$0xff]  ;;  %v3191_v52 = vld [vmem:[%s5421_s26 + $0x130] sm:$0xff]  ;;  %vm1394_vm6 = vcmask 687104   ;;  %vm1625_vm7 = vcmask 1045504   ;;  %vm1767_vm8 = vcmask 1044480  }
  0x27   :  { %3150 = vmatmul.mubr.msk.f32.gmra.mxu1 %vm90_vm0, %v62_v45  ;;  %215 = vmatprep.mubr.f32.mxu0 %v5416_v18  ;;  %v535_v51 = vld [vmem:[%s5422_s30 + $0x3] sm:$0xff]  ;;  %v536_v55 = vld [vmem:[%s5422_s30 + $0xb] sm:$0xff]  ;;  %v3188_v57 = vld [vmem:[%s5421_s26 + $0x118] sm:$0xff]  ;;  %vm2150_vm9 = vcmask 1042432   ;;  %vm2140_vm10 = vcmask 220160   ;;  %vm2260_vm11 = vcmask 252928  }
  0x28   :  { %352 = vmatprep.mubr.f32.mxu1 %v5416_v18  ;;  %v3190_v53 = vld [vmem:[%s5421_s26 + $0x128] sm:$0xff]  ;;  %v3189_v56 = vld [vmem:[%s5421_s26 + $0x120] sm:$0xff]  ;;  %v367_v58 = vld [vmem:[%s5422_s30 + $0x12] sm:$0xff]  ;;  %vm2378_vm12 = vcmask 654336   ;;  %vm3736_vm13 = vmmov 0   ;;  %vm2838_vm14 = vcmask 1041408  }
  0x29   :  { %v366_v54 = vld [vmem:[%s5422_s30 + $0xa] sm:$0xff]  ;;  %v537_v59 = vld [vmem:[%s5422_s30 + $0x13] sm:$0xff]  ;;  %v538_v63 = vld [vmem:[%s5422_s30 + $0x1b] sm:$0xff]  ;;  %vm2834_vm15 = vcmask 80896  }
  0x2a   :  { %3143 = vmatmul.mubr.msk.f32.gmra.mxu0 %vm90_vm0, %v79_v46  ;;  %v3187_v60 = vld [vmem:[%s5421_s26 + $0x110] sm:$0xff]  ;;  %v3186_v61 = vld [vmem:[%s5421_s26 + $0x108] sm:$0xff]  ;;  %v368_v62 = vld [vmem:[%s5422_s30 + $0x1a] sm:$0xff] }
  0x2b   :  { %3151 = vmatmul.mubr.msk.f32.gmra.mxu1 %vm90_vm0, %v63_v47  ;;  %221 = vmatprep.mubr.f32.mxu0 %v5416_v18  ;;  %v3185_v0 = vld [vmem:[%s5421_s26 + $0x100] sm:$0xff]  ;;  %v370_v3 = vld [vmem:[%s5422_s30 + $0x2a] sm:$0xff]  ;;  %v371_v5 = vld [vmem:[%s5422_s30 + $0x32] sm:$0xff] }
  0x2c   :  { %358 = vmatprep.mubr.f32.mxu1 %v5416_v18  ;;  %v369_v1 = vld [vmem:[%s5422_s30 + $0x22] sm:$0xff]  ;;  %v540_v4 = vld [vmem:[%s5422_s30 + $0x2b] sm:$0xff]  ;;  %v541_v6 = vld [vmem:[%s5422_s30 + $0x33] sm:$0xff] }
  0x2d   :  { %v539_v2 = vld [vmem:[%s5422_s30 + $0x23] sm:$0xff]  ;;  %v372_v7 = vld [vmem:[%s5422_s30 + $0x3a] sm:$0xff]  ;;  %v706_v10 = vld [vmem:[%s5422_s30 + $0xc] sm:$0xff] }
  0x2e   :  { %3144 = vmatmul.mubr.msk.f32.gmra.mxu0 %vm90_vm0, %v80_v48  ;;  %v542_v8 = vld [vmem:[%s5422_s30 + $0x3b] sm:$0xff]  ;;  %v705_v9 = vld [vmem:[%s5422_s30 + $0x4] sm:$0xff]  ;;  %v710_v14 = vld [vmem:[%s5422_s30 + $0x2c] sm:$0xff] }
  0x2f   :  { %3152 = vmatmul.mubr.msk.f32.gmra.mxu1 %vm90_vm0, %v64_v49  ;;  %470 = vmatprep.mubr.f32.mxu0 %v5416_v18  ;;  %v707_v11 = vld [vmem:[%s5422_s30 + $0x14] sm:$0xff]  ;;  %v708_v12 = vld [vmem:[%s5422_s30 + $0x1c] sm:$0xff]  ;;  %v709_v13 = vld [vmem:[%s5422_s30 + $0x24] sm:$0xff] }
  0x30   :  { %640 = vmatprep.mubr.f32.mxu1 %v5416_v18  ;;  %v711_v15 = vld [vmem:[%s5422_s30 + $0x34] sm:$0xff]  ;;  %v712_v16 = vld [vmem:[%s5422_s30 + $0x3c] sm:$0xff]  ;;  %s3737_s30 = smov [#allocation4]  }
  0x31   :  { %s3117_s26 = sshll.u32 %s3737_s30, 4  ;;  %s3118_s26 = int_to_ptr.vmem [resolvable:$true] %s3117_s26 }
  0x32   :  { %3161 = vmatmul.mubr.msk.f32.vlgmr.msra.gmra.mxu0 %vm90_vm0, %v365_v50  ;;  %s3690_s24 = scalar_lea.vmem %s3118_s26, 32  ;;  %p3695_p1 = scmp.lt.s32.totalorder %s3118_s26, %s3118_s26 }
  0x33   :  { %3177 = vmatmul.mubr.msk.f32.vlgmr.msra.gmra.mxu1 %vm90_vm0, %v535_v51  ;;  %476 = vmatprep.mubr.f32.mxu0 %v5416_v18  ;;  %p3691_p0 = scmp.ne.s32.totalorder %s3118_s26, %s3690_s24  ;;  %p3696_p2 = scmp.lt.s32.totalorder %s3690_s24, %s3690_s24 }
  0x34   :  { %646 = vmatprep.mubr.f32.mxu1 %v5416_v18  ;;  %771 = vmatpush1.msra.mxu0 %v3191_v52 }
  0x35   :  { %772 = vmatprep.subr.mxu0 %v3190_v53  ;;  %p3697_p3 = por %p3696_p2, %p3695_p1 }
  0x36   :  { %3162 = vmatmul.mubr.msk.f32.gmra.mxu0 %vm90_vm0, %v366_v54 }
  0x37   :  { %3178 = vmatmul.mubr.msk.f32.gmra.mxu1 %vm90_vm0, %v536_v55  ;;  %482 = vmatprep.mubr.f32.mxu0 %v5416_v18  ;;  %p3698_p4 = pnand %p3697_p3, %p3691_p0 }
  0x38   :  { %652 = vmatprep.mubr.f32.mxu1 %v5416_v18  ;;  %773 = vmatpush1.msra.mxu0 %v3189_v56 }
  0x39   :  { %774 = vmatprep.subr.mxu0 %v3188_v57 }
  0x3a   :  { %3163 = vmatmul.mubr.msk.f32.gmra.mxu0 %vm90_vm0, %v367_v58 }
  0x3b   :  { %3179 = vmatmul.mubr.msk.f32.gmra.mxu1 %vm90_vm0, %v537_v59  ;;  %488 = vmatprep.mubr.f32.mxu0 %v5416_v18 }
  0x3c   :  { %658 = vmatprep.mubr.f32.mxu1 %v5416_v18  ;;  %775 = vmatpush1.msra.mxu0 %v3187_v60 }
  0x3d   :  { %776 = vmatprep.subr.mxu0 %v3186_v61 }
  0x3e   :  { %3164 = vmatmul.mubr.msk.f32.gmra.mxu0 %vm90_vm0, %v368_v62 }
  0x3f   :  { %3180 = vmatmul.mubr.msk.f32.gmra.mxu1 %vm90_vm0, %v538_v63  ;;  %494 = vmatprep.mubr.f32.mxu0 %v5416_v18 }
  0x40   :  { %664 = vmatprep.mubr.f32.mxu1 %v5416_v18  ;;  %777 = vmatpush1.msra.mxu0 %v3185_v0 }
  0x41   :  { %1249 = vmatprep.subr.mxu0 %v5416_v18 }
  0x42   :  { %3165 = vmatmul.mubr.msk.f32.gmra.mxu0 %vm90_vm0, %v369_v1 }
  0x43   :  { %3181 = vmatmul.mubr.msk.f32.gmra.mxu1 %vm90_vm0, %v539_v2  ;;  %500 = vmatprep.mubr.f32.mxu0 %v5416_v18 }
  0x44   :  { %670 = vmatprep.mubr.f32.mxu1 %v5416_v18 }
  0x46   :  { %3166 = vmatmul.mubr.msk.f32.gmra.mxu0 %vm90_vm0, %v370_v3 }
  0x47   :  { %3182 = vmatmul.mubr.msk.f32.gmra.mxu1 %vm90_vm0, %v540_v4  ;;  %506 = vmatprep.mubr.f32.mxu0 %v5416_v18 }
  0x48   :  { %676 = vmatprep.mubr.f32.mxu1 %v5416_v18 }
  0x4a   :  { %3167 = vmatmul.mubr.msk.f32.gmra.mxu0 %vm90_vm0, %v371_v5 }
  0x4b   :  { %3183 = vmatmul.mubr.msk.f32.gmra.mxu1 %vm90_vm0, %v541_v6  ;;  %512 = vmatprep.mubr.f32.mxu0 %v5416_v18 }
  0x4c   :  { %682 = vmatprep.mubr.f32.mxu1 %v5416_v18 }
  0x4e   :  { %3168 = vmatmul.mubr.msk.f32.gmra.mxu0 %vm90_vm0, %v372_v7 }
  0x4f   :  { %3184 = vmatmul.mubr.msk.f32.gmra.mxu1 %vm90_vm0, %v542_v8  ;;  %810 = vmatprep.mubr.f32.mxu0 %v5416_v18 }
  0x50   :  { %1178 = vmatprep.mubr.f32.mxu1 %v5416_v18 }
  0x52   :  { %3193 = vmatmul.mubr.msk.f32.vlgmr.msra.gmra.mxu0 %vm90_vm0, %v705_v9 }
  0x53   :  { %816 = vmatprep.mubr.f32.mxu0 %v5416_v18 }
  0x56   :  { %3194 = vmatmul.mubr.msk.f32.gmra.mxu0 %vm90_vm0, %v706_v10 }
  0x57   :  { %822 = vmatprep.mubr.f32.mxu0 %v5416_v18 }
  0x5a   :  { %3195 = vmatmul.mubr.msk.f32.gmra.mxu0 %vm90_vm0, %v707_v11  ;;  %v877_v11 = vlaneseq }
  0x5b   :  { %828 = vmatprep.mubr.f32.mxu0 %v5416_v18 }
  0x5e   :  { %3196 = vmatmul.mubr.msk.f32.gmra.mxu0 %vm90_vm0, %v708_v12 }
  0x5f   :  { %834 = vmatprep.mubr.f32.mxu0 %v5416_v18 }
  0x62   :  { %3197 = vmatmul.mubr.msk.f32.gmra.mxu0 %vm90_vm0, %v709_v13 }
  0x63   :  { %840 = vmatprep.mubr.f32.mxu0 %v5416_v18 }
  0x66   :  { %3198 = vmatmul.mubr.msk.f32.gmra.mxu0 %vm90_vm0, %v710_v14 }
  0x67   :  { %846 = vmatprep.mubr.f32.mxu0 %v5416_v18 }
  0x6a   :  { %3199 = vmatmul.mubr.msk.f32.gmra.mxu0 %vm90_vm0, %v711_v15  ;;  %v4203_v15 = vshrl.u32 %v877_v11, 7 }
  0x6b   :  { %852 = vmatprep.mubr.f32.mxu0 %v5416_v18 }
  0x6e   :  { %3200 = vmatmul.mubr.msk.f32.gmra.mxu0 %vm90_vm0, %v712_v16 }
  0xd2   :  { %v181_v17 = vpop.f32.mrf.mxu0 }
  0xd3   :  { %v318_v19 = vpop.f32.mrf.mxu1 }
  0xd4   :  { %v319_v20 = vadd.f32 %v318_v19, %v181_v17  ;;  %v183_v21 = vpop.f32.mrf.mxu0 }
  0xd5   :  { %v320_v22 = vpop.f32.mrf.mxu1 }
  0xd6   :  { %v321_v23 = vadd.f32 %v320_v22, %v183_v21  ;;  %v187_v24 = vpop.f32.mrf.mxu0  ;;  %v875_v22 = vld [vmem:[%s5398_s2] sm:$0x3]  ;;  %s3735_s2 = smov 127  }
  0xd7   :  { %v324_v25 = vpop.f32.mrf.mxu1 }
  0xd8   :  { %v325_v26 = vadd.f32 %v324_v25, %v187_v24  ;;  %v189_v27 = vpop.f32.mrf.mxu0  ;;  %v883_v24 = vsub.s32 1, %v4203_v15 }
  0xd9   :  { %v326_v28 = vpop.f32.mrf.mxu1 }
  0xda   :  { %v327_v29 = vadd.f32 %v326_v28, %v189_v27  ;;  %v193_v30 = vpop.f32.mrf.mxu0 }
  0xdb   :  { %v330_v31 = vpop.f32.mrf.mxu1 }
  0xdc   :  { %v4151_v32 = vpop.f32.mrf.mxu0  ;;  %v331_v28 = vadd.f32 %v330_v31, %v193_v30 }
  0xdd   :  { %v4153_v33 = vpop.f32.mrf.mxu1 }
  0xde   :  { %v4155_v34 = vpop.f32.mrf.mxu0  ;;  %v333_v11 = vadd.f32 %v4153_v33, %v4151_v32 }
  0xdf   :  { %v4157_v35 = vpop.f32.mrf.mxu1 }
  0xe0   :  { %v4159_v36 = vpop.f32.mrf.mxu0 }
  0xe1   :  { %v4161_v37 = vpop.f32.mrf.mxu1 }
  0xe2   :  { %v4163_v38 = vpop.f32.mrf.mxu0 }
  0xe3   :  { %v4165_v39 = vpop.f32.mrf.mxu1 }
  0xe4   :  { %v4167_v40 = vpop.f32.mrf.mxu0  ;;  %v343_v32 = vadd.f32 %v4165_v39, %v4163_v38 }
  0xe5   :  { %v4169_v41 = vpop.f32.mrf.mxu1 }
  0xe6   :  { %v4171_v42 = vpop.f32.mrf.mxu0 }
  0xe7   :  { %v4173_v43 = vpop.f32.mrf.mxu1 }
  0xe8   :  { %v4175_v44 = vpop.f32.mrf.mxu0 }
  0xe9   :  { %v4177_v45 = vpop.f32.mrf.mxu1 }
  0xea   :  { %v4179_v46 = vpop.f32.mrf.mxu0 }
  0xeb   :  { %v4181_v47 = vpop.f32.mrf.mxu1 }
  0xec   :  { %v4183_v48 = vpop.f32.mrf.mxu0 }
  0xed   :  { %v4185_v49 = vpop.f32.mrf.mxu1 }
  0xee   :  { %v4187_v50 = vpop.f32.mrf.mxu0 }
  0xef   :  { %v4189_v51 = vpop.f32.mrf.mxu1 }
  0xf0   :  { %v4191_v52 = vpop.f32.mrf.mxu0 }
  0xf1   :  { %v4193_v53 = vpop.f32.mrf.mxu1 }
  0xf2   :  { %v472_v54 = vpop.f32.mrf.mxu0 }
  0xf3   :  { %v642_v55 = vpop.f32.mrf.mxu1  ;;  %v519_v56 = vadd.f32 %v472_v54, %v319_v20  ;;  %v5418_v20 = vsub.s32 0, %v4203_v15 }
  0xf4   :  { %v474_v57 = vpop.f32.mrf.mxu0 }
  0xf5   :  { %v644_v58 = vpop.f32.mrf.mxu1  ;;  %v520_v59 = vadd.f32 %v474_v57, %v321_v23  ;;  %v689_v25 = vadd.f32 %v642_v55, %v519_v56  ;;  %v4220_v27 = vrot.slane %v875_v22, %v5418_v20  ;;  %v337_v20 = vadd.f32 %v4157_v35, %v4155_v34 }
  0xf6   :  { %v478_v60 = vpop.f32.mrf.mxu0  ;;  %v345_v34 = vadd.f32 %v4169_v41, %v4167_v40 }
  0xf7   :  { %v521_v61 = vadd.f32 %v478_v60, %v325_v26  ;;  %v648_v62 = vpop.f32.mrf.mxu1 }
  0xf8   :  { %v480_v63 = vpop.f32.mrf.mxu0 }
  0xf9   :  { %v522_v0 = vadd.f32 %v480_v63, %v327_v29  ;;  %v650_v2 = vpop.f32.mrf.mxu1  ;;  %v690_v29 = vadd.f32 %v644_v58, %v520_v59  ;;  %v4226_v63 = vrot.slane %v875_v22, %v883_v24  ;;  %v691_v18 = vadd.f32 %v648_v62, %v521_v61 }
  0xfa   :  { %v484_v1 = vpop.f32.mrf.mxu0  ;;  %v339_v22 = vadd.f32 %v4161_v37, %v4159_v36  ;;  %v351_v36 = vadd.f32 %v4177_v45, %v4175_v44 }
  0xfb   :  { %v654_v5 = vpop.f32.mrf.mxu1  ;;  %v523_v55 = vadd.f32 %v484_v1, %v331_v28  ;;  %v692_v58 = vadd.f32 %v650_v2, %v522_v0 }
  0xfc   :  { %v486_v3 = vpop.f32.mrf.mxu0 }
  0xfd   :  { %v656_v8 = vpop.f32.mrf.mxu1  ;;  %v524_v59 = vadd.f32 %v486_v3, %v333_v11  ;;  %v693_v35 = vadd.f32 %v654_v5, %v523_v55  ;;  %v355_v5 = vadd.f32 %v4181_v47, %v4179_v46 }
  0xfe   :  { %v490_v4 = vpop.f32.mrf.mxu0 }
  0xff   :  { %v660_v12 = vpop.f32.mrf.mxu1  ;;  %v525_v33 = vadd.f32 %v490_v4, %v337_v20  ;;  %v694_v2 = vadd.f32 %v656_v8, %v524_v59  ;;  %v357_v8 = vadd.f32 %v4185_v49, %v4183_v48 }
 0x100   :  { %v492_v6 = vpop.f32.mrf.mxu0 }
 0x101   :  { %v662_v16 = vpop.f32.mrf.mxu1  ;;  %v526_v37 = vadd.f32 %v492_v6, %v339_v22  ;;  %v695_v20 = vadd.f32 %v660_v12, %v525_v33 }
 0x102   :  { %v496_v7 = vpop.f32.mrf.mxu0 }
 0x103   :  { %v4210_v21 = vpop.f32.mrf.mxu1  ;;  %v527_v28 = vadd.f32 %v496_v7, %v343_v32 }
 0x104   :  { %v4195_v9 = vpop.f32.mrf.mxu0 }
 0x105   :  { %v4222_v54 = vpop.f32.mrf.mxu1 }
 0x106   :  { %v4197_v10 = vpop.f32.mrf.mxu0 }
 0x108   :  { %v4199_v13 = vpop.f32.mrf.mxu0 }
 0x109   :  { %v530_v32 = vadd.f32 %v4199_v13, %v351_v36 }
 0x10a   :  { %v4201_v14 = vpop.f32.mrf.mxu0 }
 0x10c   :  { %v4205_v17 = vpop.f32.mrf.mxu0 }
 0x10e   :  { %v4207_v19 = vpop.f32.mrf.mxu0 }
 0x110   :  { %v4215_v23 = vpop.f32.mrf.mxu0 }
 0x112   :  { %v812_v26 = vpop.f32.mrf.mxu0 }
 0x113   :  { %v859_v57 = vadd.f32 %v812_v26, %v689_v25  ;;  %v672_v25 = vpop.f32.mrf.mxu1 }
 0x114   :  { %v814_v60 = vpop.f32.mrf.mxu0 }
 0x115   :  { %v860_v56 = vadd.f32 %v814_v60, %v690_v29  ;;  %v887_v30 = vadd.f32 %v4220_v27, %v859_v57  ;;  %v674_v3 = vpop.f32.mrf.mxu1  ;;  %v696_v57 = vadd.f32 %v662_v16, %v526_v37  ;;  %v528_v60 = vadd.f32 %v4195_v9, %v345_v34 }
 0x116   :  { %v818_v31 = vpop.f32.mrf.mxu0  ;;  %v531_v37 = vadd.f32 %v4201_v14, %v355_v5  ;;  %v532_v14 = vadd.f32 %v4205_v17, %v357_v8 }
 0x117   :  { %v861_v26 = vadd.f32 %v818_v31, %v691_v18  ;;  %v888_v61 = vadd.f32 %v4226_v63, %v860_v56  ;;  %v349_v18 = vadd.f32 %v4173_v43, %v4171_v42  ;;  %v903_v38 = vmax.f32 %v887_v30, 0.0  ;;  %v678_v56 = vpop.f32.mrf.mxu1 }
 0x118   :  { %v820_v62 = vpop.f32.mrf.mxu0  ;;  %v697_v30 = vadd.f32 %v4210_v21, %v527_v28  ;;  %v698_v22 = vadd.f32 %v4222_v54, %v528_v60 }
 0x119   :  { %v4241_v0 = vadd.f32 %v4220_v27, %v861_v26  ;;  %v862_v1 = vadd.f32 %v820_v62, %v692_v58  ;;  %v904_v42 = vmax.f32 %v888_v61, 0.0  ;;  %v936_v11 = vrot.slane %v903_v38, 1 }
 0x11a   :  { %v824_v39 = vpop.f32.mrf.mxu0  ;;  %v529_v31 = vadd.f32 %v4197_v10, %v349_v18  ;;  %v680_v10 = vpop.f32.mrf.mxu1 }
 0x11b   :  { %v905_v4 = vmax.f32 %v4241_v0, 0.0  ;;  %v4249_v40 = vadd.f32 %v4226_v63, %v862_v1  ;;  %v863_v41 = vadd.f32 %v824_v39, %v693_v35  ;;  %v939_v58 = vrot.slane %v904_v42, 1 }
 0x11c   :  { %v826_v43 = vpop.f32.mrf.mxu0  ;;  %v361_v1 = vadd.f32 %v4189_v51, %v4187_v50  ;;  %v699_v18 = vadd.f32 %v672_v25, %v529_v31  ;;  %v684_v5 = vpop.f32.mrf.mxu1 }
 0x11d   :  { %v937_v29 = vrot.slane %v905_v4, 1  ;;  %v906_v44 = vmax.f32 %v4249_v40, 0.0  ;;  %v891_v45 = vadd.f32 %v4220_v27, %v863_v41  ;;  %v864_v6 = vadd.f32 %v826_v43, %v694_v2 }
 0x11e   :  { %v830_v55 = vpop.f32.mrf.mxu0  ;;  %v363_v40 = vadd.f32 %v4193_v53, %v4191_v52  ;;  %v533_v43 = vadd.f32 %v4207_v19, %v361_v1 }
 0x11f   :  { %v940_v46 = vrot.slane %v906_v44, 1  ;;  %v907_v47 = vmax.f32 %v891_v45, 0.0  ;;  %v892_v7 = vadd.f32 %v4226_v63, %v864_v6  ;;  %v865_v12 = vadd.f32 %v830_v55, %v695_v20  ;;  %v686_v55 = vpop.f32.mrf.mxu1 }
 0x120   :  { %v832_v59 = vpop.f32.mrf.mxu0  ;;  %v938_v26 = vsel %vm935_vm1, %v936_v11, %v937_v29  ;;  %v700_v20 = vadd.f32 %v674_v3, %v530_v32  ;;  %v701_v45 = vadd.f32 %v678_v56, %v531_v37  ;;  %v534_v6 = vadd.f32 %v4215_v23, %v363_v40 }
 0x121   :  { %v942_v48 = vrot.slane %v907_v47, 1  ;;  %v908_v49 = vmax.f32 %v892_v7, 0.0  ;;  %v4263_v9 = vadd.f32 %v4220_v27, %v865_v12  ;;  %v866_v16 = vadd.f32 %v832_v59, %v696_v57 }
 0x122   :  { %v836_v33 = vpop.f32.mrf.mxu0  ;;  %v4267_v61 = vmax.f32 %v903_v38, %v938_v26  ;;  %v941_v21 = vsel %vm935_vm1, %v939_v58, %v940_v46  ;;  %v702_v11 = vadd.f32 %v680_v10, %v532_v14  ;;  %v703_v12 = vadd.f32 %v684_v5, %v533_v43 }
 0x123   :  { %v944_v62 = vrot.slane %v908_v49, 1  ;;  %v909_v34 = vmax.f32 %v4263_v9, 0.0  ;;  %v4272_v35 = vadd.f32 %v4226_v63, %v866_v16  ;;  %v867_v0 = vadd.f32 %v836_v33, %v697_v30  ;;  %v1224_v9 = vld [vmem:[%s5402_s6 + $0x78] sm:$0xff] }
 0x124   :  { %v838_v54 = vpop.f32.mrf.mxu0  ;;  %v943_v13 = vsel %vm935_vm1, %v937_v29, %v942_v48  ;;  %v4277_v36 = vmax.f32 %v904_v42, %v941_v21  ;;  %v704_v26 = vadd.f32 %v686_v55, %v534_v6  ;;  %1250 = vmatpush1.msra.mxu0 %v1224_v9  ;;  %v1217_v55 = vld [vmem:[%s5402_s6 + $0x40] sm:$0xff] }
 0x125   :  { %v4282_v38 = vrot.slane %v909_v34, 1  ;;  %v910_v39 = vmax.f32 %v4272_v35, 0.0  ;;  %v868_v2 = vadd.f32 %v838_v54, %v698_v22  ;;  %v895_v50 = vadd.f32 %v4220_v27, %v867_v0 }
 0x126   :  { %v842_v51 = vpop.f32.mrf.mxu0  ;;  %v4288_v25 = vmax.f32 %v905_v4, %v943_v13  ;;  %v945_v41 = vsel %vm935_vm1, %v940_v46, %v944_v62  ;;  %v5423_v35 = vmov 0.0  }
 0x127   :  { %v4294_v28 = vrot.slane %v910_v39, 1  ;;  %v869_v42 = vadd.f32 %v842_v51, %v699_v18  ;;  %v896_v52 = vadd.f32 %v4226_v63, %v868_v2  ;;  %v947_v4 = vsel %vm935_vm1, %v942_v48, %v4282_v38  ;;  %1251 = vmatprep.subr.mxu0 %v5423_v35 }
 0x128   :  { %v844_v53 = vpop.f32.mrf.mxu0  ;;  %v4300_v29 = vmax.f32 %v906_v44, %v945_v41  ;;  %v911_v8 = vmax.f32 %v895_v50, 0.0  ;;  %v4304_v60 = vmax.f32 %v907_v47, %v947_v4 }
 0x129   :  { %v897_v3 = vadd.f32 %v4220_v27, %v869_v42  ;;  %v870_v17 = vadd.f32 %v844_v53, %v700_v20  ;;  %v949_v19 = vsel %vm935_vm1, %v944_v62, %v4294_v28  ;;  %v912_v56 = vmax.f32 %v896_v52, 0.0 }
 0x12a   :  { %v848_v57 = vpop.f32.mrf.mxu0  ;;  %v4309_v31 = vmax.f32 %v908_v49, %v949_v19  ;;  %v950_v48 = vrot.slane %v911_v8, 1  ;;  %v1219_v19 = vld [vmem:[%s5402_s6 + $0x50] sm:$0xff] }
 0x12b   :  { %v913_v46 = vmax.f32 %v897_v3, 0.0  ;;  %v898_v7 = vadd.f32 %v4226_v63, %v870_v17  ;;  %v871_v44 = vadd.f32 %v848_v57, %v701_v45  ;;  %v952_v10 = vrot.slane %v912_v56, 1  ;;  %v1220_v57 = vld [vmem:[%s5402_s6 + $0x58] sm:$0xff] }
 0x12c   :  { %v850_v30 = vpop.f32.mrf.mxu0  ;;  %v951_v17 = vsel %vm935_vm1, %v4282_v38, %v950_v48  ;;  %v1222_v38 = vld [vmem:[%s5402_s6 + $0x68] sm:$0xff] }
 0x12d   :  { %v954_v58 = vrot.slane %v913_v46, 1  ;;  %v914_v23 = vmax.f32 %v898_v7, 0.0  ;;  %v899_v59 = vadd.f32 %v4220_v27, %v871_v44  ;;  %v872_v47 = vadd.f32 %v850_v30, %v702_v11  ;;  %v1218_v11 = vld [vmem:[%s5402_s6 + $0x48] sm:$0xff]  ;;  %v1215_v7 = vld [vmem:[%s5402_s6 + $0x30] sm:$0xff] }
 0x12e   :  { %v854_v16 = vpop.f32.mrf.mxu0  ;;  %v953_v4 = vsel %vm935_vm1, %v4294_v28, %v952_v10  ;;  %v4361_v28 = vmax.f32 %v909_v34, %v951_v17  ;;  %v1223_v34 = vld [vmem:[%s5402_s6 + $0x70] sm:$0xff]  ;;  %v1214_v44 = vld [vmem:[%s5402_s6 + $0x28] sm:$0xff] }
 0x12f   :  { %v956_v22 = vrot.slane %v914_v23, 1  ;;  %v915_v32 = vmax.f32 %v899_v59, 0.0  ;;  %v900_v33 = vadd.f32 %v4226_v63, %v872_v47  ;;  %v873_v21 = vadd.f32 %v854_v16, %v703_v12  ;;  %1252 = vmatpush1.msra.mxu0 %v1223_v34  ;;  %v1213_v12 = vld [vmem:[%s5402_s6 + $0x20] sm:$0xff]  ;;  %v1211_v30 = vld [vmem:[%s5402_s6 + $0x10] sm:$0xff]  ;;  %v1228_v47 = vld [vmem:[%s5402_s6 + $0x98] sm:$0xff] }
 0x130   :  { %v856_v62 = vpop.f32.mrf.mxu0  ;;  %v955_v0 = vsel %vm935_vm1, %v950_v48, %v954_v58  ;;  %v4350_v3 = vmax.f32 %v910_v39, %v953_v4  ;;  %1253 = vmatprep.subr.mxu0 %v5423_v35  ;;  %v1221_v39 = vld [vmem:[%s5402_s6 + $0x60] sm:$0xff] }
 0x131   :  { %v958_v1 = vrot.slane %v915_v32, 1  ;;  %v916_v49 = vmax.f32 %v900_v33, 0.0  ;;  %v901_v18 = vadd.f32 %v4220_v27, %v873_v21  ;;  %v874_v54 = vadd.f32 %v856_v62, %v704_v26  ;;  %1254 = vmatpush1.msra.mxu0 %v1222_v38  ;;  %v1229_v59 = vld [vmem:[%s5402_s6 + $0xa0] sm:$0x7f]  ;;  %v1227_v26 = vld [vmem:[%s5402_s6 + $0x90] sm:$0xff] }
 0x132   :  { %v4315_v13 = vmax.f32 %v911_v8, %v955_v0  ;;  %v957_v37 = vsel %vm935_vm1, %v952_v10, %v956_v22  ;;  %1255 = vmatprep.subr.mxu0 %v5423_v35 }
 0x133   :  { %v960_v2 = vrot.slane %v916_v49, 1  ;;  %v917_v40 = vmax.f32 %v901_v18, 0.0  ;;  %v902_v50 = vadd.f32 %v4226_v63, %v874_v54  ;;  %v4319_v51 = vmax.f32 %v912_v56, %v957_v37  ;;  %1256 = vmatpush1.msra.mxu0 %v1221_v39  ;;  %v1212_v56 = vld [vmem:[%s5402_s6 + $0x18] sm:$0xff]  ;;  %v1225_v39 = vld [vmem:[%s5402_s6 + $0x80] sm:$0xff] }
 0x134   :  { %1030 = vrot.lane.b32.xlu0 %v4315_v13, %s3735_s2  ;;  %v959_v41 = vsel %vm935_vm1, %v954_v58, %v958_v1  ;;  %1257 = vmatprep.subr.mxu0 %v5423_v35  ;;  %v1210_v58 = vld [vmem:[%s5402_s6 + $0x8] sm:$0xff] }
 0x135   :  { %v962_v20 = vrot.slane %v917_v40, 1  ;;  %1032 = vrot.lane.b32.xlu1 %v4319_v51, %s3735_s2  ;;  %v4326_v27 = vmax.f32 %v913_v46, %v959_v41  ;;  %v961_v14 = vsel %vm935_vm1, %v956_v22, %v960_v2  ;;  %v918_v5 = vmax.f32 %v902_v50, 0.0  ;;  %1258 = vmatpush1.msra.mxu0 %v1220_v57  ;;  %v1216_v46 = vld [vmem:[%s5402_s6 + $0x38] sm:$0xff]  ;;  %v1091_v57 = vld [vmem:[%s5401_s5 + $0x20] sm:$0xf] }
 0x136   :  { %v4329_v42 = vmax.f32 %v914_v23, %v961_v14  ;;  %1259 = vmatprep.subr.mxu0 %v5423_v35  ;;  %v1209_v23 = vld [vmem:[%s5402_s6] sm:$0xff] }
 0x137   :  { %v4333_v63 = vmax.f32 %v917_v40, %v962_v20  ;;  %v963_v43 = vsel %vm935_vm1, %v958_v1, %v962_v20  ;;  %v964_v52 = vrot.slane %v918_v5, 1  ;;  %1260 = vmatpush1.msra.mxu0 %v1219_v19  ;;  %v3235_v19 = vld [vmem:[%s5399_s3 + $0x158] sm:$0xf] }
 0x138   :  { %1034 = vrot.lane.b32.xlu0 %v4326_v27, %s3735_s2  ;;  %v4338_v53 = vmax.f32 %v915_v32, %v963_v43  ;;  %1261 = vmatprep.subr.mxu0 %v5423_v35 }
 0x139   :  { %1036 = vrot.lane.b32.xlu1 %v4329_v42, %s3735_s2  ;;  %v4346_v45 = vmax.f32 %v918_v5, %v964_v52  ;;  %v965_v6 = vsel %vm935_vm1, %v960_v2, %v964_v52  ;;  %1262 = vmatpush1.msra.mxu0 %v1218_v11  ;;  %v3269_v11 = vld [vmem:[%s5399_s3 + $0x208] sm:$0xf] }
 0x13a   :  { %v4363_v8 = vmax.f32 %v916_v49, %v965_v6  ;;  %1263 = vmatprep.subr.mxu0 %v5423_v35 }
 0x13b   :  { %1264 = vmatpush1.msra.mxu0 %v1217_v55  ;;  %v3233_v55 = vld [vmem:[%s5399_s3 + $0x148] sm:$0xff] }
 0x13c   :  { %1042 = vrot.lane.b32.xlu0 %v4333_v63, %s3735_s2  ;;  %1265 = vmatprep.subr.mxu0 %v5423_v35 }
 0x13d   :  { %1038 = vrot.lane.b32.xlu1 %v4338_v53, %s3735_s2  ;;  %1266 = vmatpush1.msra.mxu0 %v1216_v46  ;;  %v3234_v46 = vld [vmem:[%s5399_s3 + $0x150] sm:$0xf] }
 0x13e   :  { %1267 = vmatprep.subr.mxu0 %v5423_v35 }
 0x13f   :  { %1268 = vmatpush1.msra.mxu0 %v1215_v7  ;;  %v3232_v7 = vld [vmem:[%s5399_s3 + $0x140] sm:$0xff] }
 0x140   :  { %1044 = vrot.lane.b32.xlu0 %v4346_v45, %s3735_s2  ;;  %1269 = vmatprep.subr.mxu0 %v5423_v35 }
 0x141   :  { %1028 = vrot.lane.b32.xlu1 %v4350_v3, %s3735_s2  ;;  %1270 = vmatpush1.msra.mxu0 %v1214_v44  ;;  %v3231_v44 = vld [vmem:[%s5399_s3 + $0x138] sm:$0xff] }
 0x142   :  { %1271 = vmatprep.subr.mxu0 %v5423_v35 }
 0x143   :  { %1272 = vmatpush1.msra.mxu0 %v1213_v12  ;;  %v3230_v12 = vld [vmem:[%s5399_s3 + $0x130] sm:$0xff] }
 0x144   :  { %1026 = vrot.lane.b32.xlu0 %v4361_v28, %s3735_s2  ;;  %1273 = vmatprep.subr.mxu0 %v5423_v35 }
 0x145   :  { %1040 = vrot.lane.b32.xlu1 %v4363_v8, %s3735_s2  ;;  %1274 = vmatpush1.msra.mxu0 %v1212_v56  ;;  %v3229_v56 = vld [vmem:[%s5399_s3 + $0x128] sm:$0xff] }
 0x146   :  { %1275 = vmatprep.subr.mxu0 %v5423_v35 }
 0x147   :  { %1276 = vmatpush1.msra.mxu0 %v1211_v30  ;;  %v3228_v30 = vld [vmem:[%s5399_s3 + $0x120] sm:$0xff] }
 0x148   :  { %1022 = vrot.lane.b32.xlu0 %v4304_v60, %s3735_s2  ;;  %1277 = vmatprep.subr.mxu0 %v5423_v35 }
 0x149   :  { %1024 = vrot.lane.b32.xlu1 %v4309_v31, %s3735_s2  ;;  %1278 = vmatpush1.msra.mxu0 %v1210_v58  ;;  %v3227_v58 = vld [vmem:[%s5399_s3 + $0x118] sm:$0xff] }
 0x14a   :  { %1279 = vmatprep.subr.mxu0 %v5423_v35 }
 0x14b   :  { %1280 = vmatpush1.msra.mxu0 %v1209_v23  ;;  %v3226_v23 = vld [vmem:[%s5399_s3 + $0x110] sm:$0xff] }
 0x14c   :  { %1018 = vrot.lane.b32.xlu0 %v4288_v25, %s3735_s2  ;;  %1303 = vmatprep.subr.mxu0 %v5423_v35 }
 0x14d   :  { %1020 = vrot.lane.b32.xlu1 %v4300_v29, %s3735_s2  ;;  %3208 = vmatpush2.msk.msra.mxu0 %vm935_vm1, %v1229_v59  ;;  %v3225_v59 = vld [vmem:[%s5399_s3 + $0x108] sm:$0xff] }
 0x14e   :  { %1305 = vmatprep.subr.mxu0 %v5423_v35 }
 0x14f   :  { %1306 = vmatpush2.msra.mxu0 %v1228_v47  ;;  %v3224_v47 = vld [vmem:[%s5399_s3 + $0x100] sm:$0xff] }
 0x150   :  { %1014 = vrot.lane.b32.xlu0 %v4267_v61, %s3735_s2  ;;  %1307 = vmatprep.subr.mxu0 %v5423_v35 }
 0x151   :  { %1016 = vrot.lane.b32.xlu1 %v4277_v36, %s3735_s2  ;;  %1308 = vmatpush2.msra.mxu0 %v1227_v26  ;;  %v3223_v26 = vld [vmem:[%s5399_s3 + $0xf8] sm:$0xff] }
 0x152   :  { %1309 = vmatprep.subr.mxu0 %v5423_v35 }
 0x1a6   :  { %v1031_v48 = vpop.permute.xlu0 %1030 }
 0x1a7   :  { %v1033_v16 = vpop.permute.xlu1 %1032 }
 0x1a8   :  { %v1051_v41 = vsel %vm1046_vm2, %v1031_v48, %v1033_v16  ;;  %v1080_v43 = vmax.f32 %v4319_v51, %v1033_v16  ;;  %v3222_v48 = vld [vmem:[%s5399_s3 + $0xf0] sm:$0xff]  ;;  %v3221_v16 = vld [vmem:[%s5399_s3 + $0xe8] sm:$0xff] }
 0x1a9   :  { %v1079_v4 = vmax.f32 %v4315_v13, %v1051_v41  ;;  %v3259_v41 = vld [vmem:[%s5399_s3 + $0x1b8] sm:$0xff] }
 0x1aa   :  { %v1035_v22 = vpop.permute.xlu0 %1034 }
 0x1ab   :  { %v1037_v32 = vpop.permute.xlu1 %1036 }
 0x1ac   :  { %v1052_v37 = vsel %vm1046_vm2, %v1035_v22, %v1037_v32  ;;  %v1082_v20 = vmax.f32 %v4329_v42, %v1037_v32 }
 0x1ad   :  { %v1081_v5 = vmax.f32 %v4326_v27, %v1052_v37  ;;  %v3262_v37 = vld [vmem:[%s5399_s3 + $0x1d0] sm:$0xff] }
 0x1ae   :  { %v1043_v33 = vpop.permute.xlu0 %1042 }
 0x1af   :  { %v1039_v21 = vpop.permute.xlu1 %1038 }
 0x1b2   :  { %v1045_v10 = vpop.permute.xlu0 %1044 }
 0x1b3   :  { %v1054_v62 = vsel %vm1046_vm2, %v1043_v33, %v1045_v10  ;;  %v1086_v0 = vmax.f32 %v4346_v45, %v1045_v10  ;;  %v1029_v1 = vpop.permute.xlu1 %1028  ;;  %v3268_v33 = vld [vmem:[%s5399_s3 + $0x200] sm:$0xf] }
 0x1b4   :  { %v1085_v49 = vmax.f32 %v4333_v63, %v1054_v62  ;;  %v3266_v62 = vld [vmem:[%s5399_s3 + $0x1f0] sm:$0xff] }
 0x1b5   :  { %3201 = vmatprep.subr.msk.mxu1 %vm935_vm1, %v1086_v0  ;;  %v3265_v0 = vld [vmem:[%s5399_s3 + $0x1e8] sm:$0xff] }
 0x1b6   :  { %3202 = vmatpush1.msk.msra.mxu1 %vm935_vm1, %v1085_v49  ;;  %v1027_v18 = vpop.permute.xlu0 %1026  ;;  %v3264_v49 = vld [vmem:[%s5399_s3 + $0x1e0] sm:$0xff] }
 0x1b7   :  { %v1041_v54 = vpop.permute.xlu1 %1040  ;;  %v1050_v52 = vsel %vm1046_vm2, %v1027_v18, %v1029_v1  ;;  %v3263_v18 = vld [vmem:[%s5399_s3 + $0x1d8] sm:$0xff] }
 0x1b8   :  { %v1053_v2 = vsel %vm1046_vm2, %v1039_v21, %v1041_v54  ;;  %v1084_v40 = vmax.f32 %v4363_v8, %v1041_v54  ;;  %v1077_v42 = vmax.f32 %v4361_v28, %v1050_v52  ;;  %v3267_v21 = vld [vmem:[%s5399_s3 + $0x1f8] sm:$0xff] }
 0x1b9   :  { %v1083_v50 = vmax.f32 %v4338_v53, %v1053_v2  ;;  %v1078_v53 = vmax.f32 %v4350_v3, %v1029_v1  ;;  %v3261_v2 = vld [vmem:[%s5399_s3 + $0x1c8] sm:$0xff]  ;;  %v3255_v52 = vld [vmem:[%s5399_s3 + $0x198] sm:$0xff] }
 0x1ba   :  { %v1023_v14 = vpop.permute.xlu0 %1022  ;;  %1132 = vmatprep.subr.mxu1 %v1084_v40 }
 0x1bb   :  { %1133 = vmatpush1.msra.mxu1 %v1083_v50  ;;  %v1025_v63 = vpop.permute.xlu1 %1024  ;;  %v3260_v50 = vld [vmem:[%s5399_s3 + $0x1c0] sm:$0xff] }
 0x1bc   :  { %1134 = vmatprep.subr.mxu1 %v1082_v20  ;;  %v1049_v45 = vsel %vm1046_vm2, %v1023_v14, %v1025_v63  ;;  %v1076_v6 = vmax.f32 %v4309_v31, %v1025_v63  ;;  %v3258_v14 = vld [vmem:[%s5399_s3 + $0x1b0] sm:$0xff] }
 0x1bd   :  { %1135 = vmatpush1.msra.mxu1 %v1081_v5  ;;  %v1075_v8 = vmax.f32 %v4304_v60, %v1049_v45  ;;  %v1087_v60 = vld [vmem:[%s5401_s5] sm:$0xff]  ;;  %v3257_v5 = vld [vmem:[%s5399_s3 + $0x1a8] sm:$0xff] }
 0x1be   :  { %v1019_v17 = vpop.permute.xlu0 %1018  ;;  %1136 = vmatprep.subr.mxu1 %v1080_v43  ;;  %v3256_v43 = vld [vmem:[%s5399_s3 + $0x1a0] sm:$0xff] }
 0x1bf   :  { %1137 = vmatpush1.msra.mxu1 %v1079_v4  ;;  %v1021_v27 = vpop.permute.xlu1 %1020  ;;  %v3220_v4 = vld [vmem:[%s5399_s3 + $0xe0] sm:$0xff] }
 0x1c0   :  { %v1048_v51 = vsel %vm1046_vm2, %v1019_v17, %v1021_v27  ;;  %1138 = vmatprep.subr.mxu1 %v1078_v53  ;;  %v1074_v13 = vmax.f32 %v4300_v29, %v1021_v27  ;;  %v1226_v29 = vld [vmem:[%s5402_s6 + $0x88] sm:$0xff]  ;;  %v3254_v53 = vld [vmem:[%s5399_s3 + $0x190] sm:$0xff]  ;;  %v3219_v17 = vld [vmem:[%s5399_s3 + $0xd8] sm:$0xff] }
 0x1c1   :  { %1139 = vmatpush1.msra.mxu1 %v1077_v42  ;;  %v1073_v3 = vmax.f32 %v4288_v25, %v1048_v51  ;;  %v1088_v25 = vld [vmem:[%s5401_s5 + $0x8] sm:$0xff]  ;;  %1310 = vmatpush2.msra.mxu0 %v1226_v29  ;;  %v3218_v27 = vld [vmem:[%s5399_s3 + $0xd0] sm:$0xff] }
 0x1c2   :  { %1140 = vmatprep.subr.mxu1 %v1076_v6  ;;  %v1015_v9 = vpop.permute.xlu0 %1014  ;;  %1311 = vmatprep.subr.mxu0 %v5423_v35  ;;  %v3253_v42 = vld [vmem:[%s5399_s3 + $0x188] sm:$0xff]  ;;  %v3252_v6 = vld [vmem:[%s5399_s3 + $0x180] sm:$0xff] }
 0x1c3   :  { %1141 = vmatpush1.msra.mxu1 %v1075_v8  ;;  %v1017_v34 = vpop.permute.xlu1 %1016  ;;  %1312 = vmatpush2.msra.mxu0 %v1225_v39  ;;  %v3217_v51 = vld [vmem:[%s5399_s3 + $0xc8] sm:$0xff] }
 0x1c4   :  { %v1047_v28 = vsel %vm1046_vm2, %v1015_v9, %v1017_v34  ;;  %v1072_v38 = vmax.f32 %v4277_v36, %v1017_v34  ;;  %1142 = vmatprep.subr.mxu1 %v1074_v13  ;;  %v1090_v36 = vld [vmem:[%s5401_s5 + $0x18] sm:$0xff]  ;;  %3270 = vmatprep.subr.msk.mxu0 %vm1403_vm4, %v3269_v11  ;;  %v3250_v9 = vld [vmem:[%s5399_s3 + $0x170] sm:$0xff] }
 0x1c5   :  { %v1071_v31 = vmax.f32 %v4267_v61, %v1047_v28  ;;  %1143 = vmatpush1.msra.mxu1 %v1073_v3  ;;  %v1089_v61 = vld [vmem:[%s5401_s5 + $0x10] sm:$0xff]  ;;  %v3251_v13 = vld [vmem:[%s5399_s3 + $0x178] sm:$0xff]  ;;  %v3216_v3 = vld [vmem:[%s5399_s3 + $0xc0] sm:$0xff] }
 0x1c6   :  { %1144 = vmatprep.subr.mxu1 %v1072_v38  ;;  %v3215_v34 = vld [vmem:[%s5399_s3 + $0xb8] sm:$0xff]  ;;  %v3249_v28 = vld [vmem:[%s5399_s3 + $0x168] sm:$0xff]  ;;  %v3214_v38 = vld [vmem:[%s5399_s3 + $0xb0] sm:$0xff] }
 0x1c7   :  { %1145 = vmatpush1.msra.mxu1 %v1071_v31  ;;  %v3248_v31 = vld [vmem:[%s5399_s3 + $0x160] sm:$0xff] }
 0x1c8   :  { %3203 = vmatmul.mubr.msk.f32.vlgmr.msra.gmra.mxu1 %vm1092_vm3, %v1087_v60  ;;  %3236 = vmatprep.subr.msk.mxu1 %vm1403_vm4, %v3235_v19  ;;  %v1359_v60 = vld [vmem:[%s5399_s3 + $0xa8] sm:$0xf] }
 0x1c9   :  { %1184 = vmatprep.mubr.f32.mxu1 %v5423_v35  ;;  %3237 = vmatpush1.msk.msra.mxu1 %vm1403_vm4, %v3234_v46  ;;  %v1358_v46 = vld [vmem:[%s5399_s3 + $0xa0] sm:$0xf] }
 0x1ca   :  { %1422 = vmatprep.subr.mxu1 %v3233_v55 }
 0x1cb   :  { %1423 = vmatpush1.msra.mxu1 %v3232_v7  ;;  %v3324_v7 = vld [vmem:[%s5399_s3 + $0x360] sm:$0xf] }
 0x1cc   :  { %3204 = vmatmul.mubr.msk.f32.gmra.mxu1 %vm1092_vm3, %v1088_v25  ;;  %1424 = vmatprep.subr.mxu1 %v3231_v44  ;;  %v3325_v25 = vld [vmem:[%s5399_s3 + $0x368] sm:$0xf] }
 0x1cd   :  { %1190 = vmatprep.mubr.f32.mxu1 %v5423_v35  ;;  %1425 = vmatpush1.msra.mxu1 %v3230_v12 }
 0x1ce   :  { %1426 = vmatprep.subr.mxu1 %v3229_v56  ;;  %v1357_v56 = vld [vmem:[%s5399_s3 + $0x98] sm:$0xff] }
 0x1cf   :  { %1427 = vmatpush1.msra.mxu1 %v3228_v30  ;;  %v3323_v30 = vld [vmem:[%s5399_s3 + $0x358] sm:$0xff] }
 0x1d0   :  { %3205 = vmatmul.mubr.msk.f32.gmra.mxu1 %vm1092_vm3, %v1089_v61  ;;  %1428 = vmatprep.subr.mxu1 %v3227_v58 }
 0x1d1   :  { %1196 = vmatprep.mubr.f32.mxu1 %v5423_v35  ;;  %1429 = vmatpush1.msra.mxu1 %v3226_v23  ;;  %v1356_v23 = vld [vmem:[%s5399_s3 + $0x90] sm:$0xff] }
 0x1d2   :  { %1430 = vmatprep.subr.mxu1 %v3225_v59  ;;  %v3322_v59 = vld [vmem:[%s5399_s3 + $0x350] sm:$0xff] }
 0x1d3   :  { %1431 = vmatpush1.msra.mxu1 %v3224_v47  ;;  %v1355_v47 = vld [vmem:[%s5399_s3 + $0x88] sm:$0xff] }
 0x1d4   :  { %3206 = vmatmul.mubr.msk.f32.gmra.mxu1 %vm1092_vm3, %v1090_v36  ;;  %1432 = vmatprep.subr.mxu1 %v3223_v26 }
 0x1d5   :  { %1202 = vmatprep.mubr.f32.mxu1 %v5423_v35  ;;  %1433 = vmatpush1.msra.mxu1 %v3222_v48 }
 0x1d6   :  { %1434 = vmatprep.subr.mxu1 %v3221_v16  ;;  %v3321_v16 = vld [vmem:[%s5399_s3 + $0x348] sm:$0xff] }
 0x1d7   :  { %1435 = vmatpush1.msra.mxu1 %v3220_v4  ;;  %v3313_v4 = vld [vmem:[%s5399_s3 + $0x308] sm:$0xff] }
 0x1d8   :  { %3207 = vmatmul.mubr.msk.f32.gmra.mxu1 %vm1092_vm3, %v1091_v57  ;;  %1436 = vmatprep.subr.mxu1 %v3219_v17  ;;  %v1346_v17 = vld [vmem:[%s5399_s3 + $0x40] sm:$0xff] }
 0x1d9   :  { %1474 = vmatprep.mubr.f32.mxu1 %v5423_v35  ;;  %1437 = vmatpush1.msra.mxu1 %v3218_v27  ;;  %v1345_v27 = vld [vmem:[%s5399_s3 + $0x38] sm:$0xff] }
 0x1da   :  { %1438 = vmatprep.subr.mxu1 %v3217_v51  ;;  %v1344_v51 = vld [vmem:[%s5399_s3 + $0x30] sm:$0xff] }
 0x1db   :  { %1439 = vmatpush1.msra.mxu1 %v3216_v3  ;;  %v3309_v3 = vld [vmem:[%s5399_s3 + $0x2e8] sm:$0xff] }
 0x1dc   :  { %1440 = vmatprep.subr.mxu1 %v3215_v34  ;;  %v3308_v34 = vld [vmem:[%s5399_s3 + $0x2e0] sm:$0xff] }
 0x1dd   :  { %1441 = vmatpush1.msra.mxu1 %v3214_v38  ;;  %v3307_v38 = vld [vmem:[%s5399_s3 + $0x2d8] sm:$0xff] }
 0x1de   :  { %3242 = vmatprep.subr.msk.mxu1 %vm1403_vm4, %v1359_v60  ;;  %v3306_v60 = vld [vmem:[%s5399_s3 + $0x2d0] sm:$0xff] }
 0x288   :  { %v1180_v22 = vpop.f32.mrf.mxu1 }
 0x28a   :  { %v1182_v32 = vpop.f32.mrf.mxu1 }
 0x28b   :  { %3209 = vmatprep.mubr.msk.f32.mxu0 %vm1230_vm5, %v1182_v32 }
 0x28c   :  { %v1186_v10 = vpop.f32.mrf.mxu1  ;;  %1314 = vmatmul.mubr.f32.vlgmr.msra.gmra.mxu0 %v1180_v22 }
 0x28d   :  { %3271 = vmatpush1.msk.msra.mxu0 %vm1403_vm4, %v3268_v33 }
 0x28e   :  { %v1188_v1 = vpop.f32.mrf.mxu1  ;;  %1659 = vmatprep.subr.mxu0 %v3267_v21  ;;  %v1354_v21 = vld [vmem:[%s5399_s3 + $0x80] sm:$0xff] }
 0x28f   :  { %3210 = vmatprep.mubr.msk.f32.mxu0 %vm1230_vm5, %v1188_v1  ;;  %1660 = vmatpush1.msra.mxu0 %v3266_v62  ;;  %v3319_v1 = vld [vmem:[%s5399_s3 + $0x338] sm:$0xff] }
 0x290   :  { %v1192_v54 = vpop.f32.mrf.mxu1  ;;  %1319 = vmatmul.mubr.f32.gmra.mxu0 %v1186_v10  ;;  %1661 = vmatprep.subr.mxu0 %v3265_v0  ;;  %v3320_v10 = vld [vmem:[%s5399_s3 + $0x340] sm:$0xff]  ;;  %v1353_v0 = vld [vmem:[%s5399_s3 + $0x78] sm:$0xff] }
 0x291   :  { %1662 = vmatpush1.msra.mxu0 %v3264_v49  ;;  %v1352_v49 = vld [vmem:[%s5399_s3 + $0x70] sm:$0xff] }
 0x292   :  { %v1194_v40 = vpop.f32.mrf.mxu1  ;;  %1663 = vmatprep.subr.mxu0 %v3263_v18  ;;  %v3318_v18 = vld [vmem:[%s5399_s3 + $0x330] sm:$0xff] }
 0x293   :  { %3211 = vmatprep.mubr.msk.f32.mxu0 %vm1230_vm5, %v1194_v40  ;;  %1664 = vmatpush1.msra.mxu0 %v3262_v37  ;;  %v1351_v37 = vld [vmem:[%s5399_s3 + $0x68] sm:$0xff]  ;;  %v1350_v40 = vld [vmem:[%s5399_s3 + $0x60] sm:$0xff] }
 0x294   :  { %1324 = vmatmul.mubr.f32.gmra.mxu0 %v1192_v54  ;;  %v1198_v20 = vpop.f32.mrf.mxu1  ;;  %1665 = vmatprep.subr.mxu0 %v3261_v2  ;;  %v3317_v2 = vld [vmem:[%s5399_s3 + $0x328] sm:$0xff] }
 0x295   :  { %1666 = vmatpush1.msra.mxu0 %v3260_v50  ;;  %v3316_v50 = vld [vmem:[%s5399_s3 + $0x320] sm:$0xff] }
 0x296   :  { %v1200_v63 = vpop.f32.mrf.mxu1  ;;  %1667 = vmatprep.subr.mxu0 %v3259_v41  ;;  %v1349_v41 = vld [vmem:[%s5399_s3 + $0x58] sm:$0xff] }
 0x297   :  { %3212 = vmatprep.mubr.msk.f32.mxu0 %vm1230_vm5, %v1200_v63  ;;  %1668 = vmatpush1.msra.mxu0 %v3258_v14  ;;  %v1348_v63 = vld [vmem:[%s5399_s3 + $0x50] sm:$0xff] }
 0x298   :  { %1329 = vmatmul.mubr.f32.gmra.mxu0 %v1198_v20  ;;  %1669 = vmatprep.subr.mxu0 %v3257_v5  ;;  %v1204_v45 = vpop.f32.mrf.mxu1  ;;  %v3315_v20 = vld [vmem:[%s5399_s3 + $0x318] sm:$0xff] }
 0x299   :  { %1670 = vmatpush1.msra.mxu0 %v3256_v43  ;;  %v3314_v43 = vld [vmem:[%s5399_s3 + $0x310] sm:$0xff] }
 0x29a   :  { %1671 = vmatprep.subr.mxu0 %v3255_v52  ;;  %v1206_v8 = vpop.f32.mrf.mxu1  ;;  %v1347_v52 = vld [vmem:[%s5399_s3 + $0x48] sm:$0xff] }
 0x29b   :  { %1672 = vmatpush1.msra.mxu0 %v3254_v53  ;;  %3213 = vmatprep.mubr.msk.f32.mxu0 %vm1230_vm5, %v1206_v8  ;;  %v3310_v8 = vld [vmem:[%s5399_s3 + $0x2f0] sm:$0xff] }
 0x29c   :  { %1673 = vmatprep.subr.mxu0 %v3253_v42  ;;  %1334 = vmatmul.mubr.f32.gmra.mxu0 %v1204_v45  ;;  %v3312_v42 = vld [vmem:[%s5399_s3 + $0x300] sm:$0xff] }
 0x29d   :  { %1674 = vmatpush1.msra.mxu0 %v3252_v6  ;;  %1711 = vmatprep.mubr.f32.mxu0 %v5423_v35  ;;  %v3311_v6 = vld [vmem:[%s5399_s3 + $0x2f8] sm:$0xff] }
 0x29e   :  { %1675 = vmatprep.subr.mxu0 %v3251_v13  ;;  %v1343_v13 = vld [vmem:[%s5399_s3 + $0x28] sm:$0xff] }
 0x29f   :  { %1676 = vmatpush1.msra.mxu0 %v3250_v9  ;;  %v1342_v9 = vld [vmem:[%s5399_s3 + $0x20] sm:$0xff] }
 0x2a0   :  { %1677 = vmatprep.subr.mxu0 %v3249_v28  ;;  %v1341_v28 = vld [vmem:[%s5399_s3 + $0x18] sm:$0xff] }
 0x2a1   :  { %1678 = vmatpush1.msra.mxu0 %v3248_v31  ;;  %v1340_v31 = vld [vmem:[%s5399_s3 + $0x10] sm:$0xff] }
 0x2a2   :  { %3326 = vmatprep.subr.msk.mxu0 %vm1403_vm4, %v3325_v25  ;;  %v1339_v25 = vld [vmem:[%s5399_s3 + $0x8] sm:$0xff] }
 0x34c   :  { %v4666_v61 = vpop.f32.mrf.mxu0 }
 0x34d   :  { %v1387_v39 = vrot.slane %v4666_v61, 1  ;;  %v1626_v57 = vrot.slane %v4666_v61, 2 }
 0x34e   :  { %v1317_v36 = vpop.f32.mrf.mxu0 }
 0x34f   :  { %v3305_v36 = vld [vmem:[%s5399_s3 + $0x2c8] sm:$0xff] }
 0x350   :  { %v4668_v29 = vpop.f32.mrf.mxu0 }
 0x351   :  { %v1388_v19 = vrot.slane %v4668_v29, 1  ;;  %v1627_v11 = vrot.slane %v4668_v29, 2 }
 0x352   :  { %v1322_v55 = vpop.f32.mrf.mxu0 }
 0x353   :  { %v1389_v44 = vsel %vm935_vm1, %v1387_v39, %v1388_v19  ;;  %v1628_v12 = vsel %vm1625_vm7, %v1626_v57, %v1627_v11  ;;  %v1338_v39 = vld [vmem:[%s5399_s3] sm:$0xff]  ;;  %v1910_v57 = vrot.slane %v4668_v29, 4  ;;  %v1909_v55 = vrot.slane %v4666_v61, 4 }
 0x354   :  { %v4688_v58 = vpop.f32.mrf.mxu0  ;;  %3238 = vmatmul.mubr.msk.f32.vlgmr.msra.gmra.mxu1 %vm1394_vm6, %v1389_v44  ;;  %3272 = vmatmul.mubr.msk.f32.vlgmr.msra.gmra.mxu0 %vm1394_vm6, %v1628_v12  ;;  %v3294_v12 = vld [vmem:[%s5399_s3 + $0x2a0] sm:$0xff] }
 0x355   :  { %3243 = vmatpush1.msk.msra.mxu1 %vm1403_vm4, %v1358_v46  ;;  %3327 = vmatpush1.msk.msra.mxu0 %vm1403_vm4, %v3324_v7  ;;  %v1390_v26 = vrot.slane %v4688_v58, 1  ;;  %v1629_v48 = vrot.slane %v4688_v58, 2  ;;  %v3296_v46 = vld [vmem:[%s5399_s3 + $0x2b0] sm:$0xf]  ;;  %v3295_v7 = vld [vmem:[%s5399_s3 + $0x2a8] sm:$0xff]  ;;  %v1911_v44 = vsel %vm1403_vm4, %v1909_v55, %v1910_v57 }
 0x356   :  { %1525 = vmatprep.subr.mxu1 %v1357_v56  ;;  %1942 = vmatprep.subr.mxu0 %v3323_v30  ;;  %v1327_v22 = vpop.f32.mrf.mxu0  ;;  %v1912_v56 = vrot.slane %v4688_v58, 4  ;;  %v3293_v30 = vld [vmem:[%s5399_s3 + $0x298] sm:$0xff] }
 0x357   :  { %1526 = vmatpush1.msra.mxu1 %v1356_v23  ;;  %1943 = vmatpush1.msra.mxu0 %v3322_v59  ;;  %v1391_v32 = vsel %vm935_vm1, %v1388_v19, %v1390_v26  ;;  %v1630_v33 = vsel %vm1625_vm7, %v1627_v11, %v1629_v48  ;;  %v3304_v19 = vld [vmem:[%s5399_s3 + $0x2c0] sm:$0xff]  ;;  %v3297_v11 = vld [vmem:[%s5399_s3 + $0x2b8] sm:$0xf]  ;;  %v3292_v23 = vld [vmem:[%s5399_s3 + $0x290] sm:$0xff] }
 0x358   :  { %1480 = vmatprep.mubr.f32.mxu1 %v5423_v35  ;;  %1527 = vmatprep.subr.mxu1 %v1355_v47  ;;  %v4717_v62 = vpop.f32.mrf.mxu0  ;;  %v3291_v59 = vld [vmem:[%s5399_s3 + $0x288] sm:$0xff]  ;;  %v1913_v47 = vsel %vm1403_vm4, %v1910_v57, %v1912_v56  ;;  %v3288_v22 = vld [vmem:[%s5399_s3 + $0x270] sm:$0xff] }
 0x359   :  { %1717 = vmatprep.mubr.f32.mxu0 %v5423_v35  ;;  %1944 = vmatprep.subr.mxu0 %v3321_v16  ;;  %v1392_v14 = vrot.slane %v4717_v62, 1  ;;  %v1631_v5 = vrot.slane %v4717_v62, 2  ;;  %v3289_v16 = vld [vmem:[%s5399_s3 + $0x278] sm:$0xff] }
 0x35a   :  { %3239 = vmatmul.mubr.msk.f32.gmra.mxu1 %vm1394_vm6, %v1391_v32  ;;  %3273 = vmatmul.mubr.msk.f32.gmra.mxu0 %vm1394_vm6, %v1630_v33  ;;  %v1332_v54 = vpop.f32.mrf.mxu0  ;;  %v3287_v32 = vld [vmem:[%s5399_s3 + $0x268] sm:$0xff] }
 0x35b   :  { %1528 = vmatpush1.msra.mxu1 %v1354_v21  ;;  %1945 = vmatpush1.msra.mxu0 %v3320_v10  ;;  %v1393_v53 = vsel %vm935_vm1, %v1390_v26, %v1392_v14  ;;  %v1632_v45 = vsel %vm1625_vm7, %v1629_v48, %v1631_v5  ;;  %v3290_v26 = vld [vmem:[%s5399_s3 + $0x280] sm:$0xff]  ;;  %v1914_v48 = vrot.slane %v4717_v62, 4  ;;  %v3285_v10 = vld [vmem:[%s5399_s3 + $0x258] sm:$0xff]  ;;  %v3280_v54 = vld [vmem:[%s5399_s3 + $0x230] sm:$0xff] }
 0x35c   :  { %1529 = vmatprep.subr.mxu1 %v1353_v0  ;;  %1946 = vmatprep.subr.mxu0 %v3319_v1  ;;  %v3286_v21 = vld [vmem:[%s5399_s3 + $0x260] sm:$0xff]  ;;  %v3284_v0 = vld [vmem:[%s5399_s3 + $0x250] sm:$0xff]  ;;  %v3283_v1 = vld [vmem:[%s5399_s3 + $0x248] sm:$0xff] }
 0x35d   :  { %1530 = vmatpush1.msra.mxu1 %v1352_v49  ;;  %1947 = vmatpush1.msra.mxu0 %v3318_v18  ;;  %v1915_v33 = vsel %vm1403_vm4, %v1912_v56, %v1914_v48  ;;  %v3282_v49 = vld [vmem:[%s5399_s3 + $0x240] sm:$0xff]  ;;  %v3281_v18 = vld [vmem:[%s5399_s3 + $0x238] sm:$0xff] }
 0x35e   :  { %1531 = vmatprep.subr.mxu1 %v1351_v37  ;;  %1948 = vmatprep.subr.mxu0 %v3317_v2  ;;  %v3279_v37 = vld [vmem:[%s5399_s3 + $0x228] sm:$0xff]  ;;  %v3278_v2 = vld [vmem:[%s5399_s3 + $0x220] sm:$0xff] }
 0x35f   :  { %1532 = vmatpush1.msra.mxu1 %v1350_v40  ;;  %1949 = vmatpush1.msra.mxu0 %v3316_v50  ;;  %v1769_v40 = vrot.slane %v4668_v29, 3  ;;  %v3277_v50 = vld [vmem:[%s5399_s3 + $0x218] sm:$0xff] }
 0x360   :  { %1533 = vmatprep.subr.mxu1 %v1349_v41  ;;  %1950 = vmatprep.subr.mxu0 %v3315_v20  ;;  %v3276_v41 = vld [vmem:[%s5399_s3 + $0x210] sm:$0xff]  ;;  %v1768_v20 = vrot.slane %v4666_v61, 3 }
 0x361   :  { %1534 = vmatpush1.msra.mxu1 %v1348_v63  ;;  %1951 = vmatpush1.msra.mxu0 %v3314_v43  ;;  %v1773_v63 = vrot.slane %v4717_v62, 3  ;;  %v1335_v43 = vpop.f32.mrf.mxu0 }
 0x362   :  { %1486 = vmatprep.mubr.f32.mxu1 %v5423_v35  ;;  %1535 = vmatprep.subr.mxu1 %v1347_v52 }
 0x363   :  { %1723 = vmatprep.mubr.f32.mxu0 %v5423_v35  ;;  %1952 = vmatprep.subr.mxu0 %v3313_v4 }
 0x364   :  { %3240 = vmatmul.mubr.msk.f32.gmra.mxu1 %vm1394_vm6, %v1393_v53  ;;  %3274 = vmatmul.mubr.msk.f32.gmra.mxu0 %vm1394_vm6, %v1632_v45 }
 0x365   :  { %1536 = vmatpush1.msra.mxu1 %v1346_v17  ;;  %1953 = vmatpush1.msra.mxu0 %v3312_v42 }
 0x366   :  { %1537 = vmatprep.subr.mxu1 %v1345_v27  ;;  %1954 = vmatprep.subr.mxu0 %v3311_v6 }
 0x367   :  { %1538 = vmatpush1.msra.mxu1 %v1344_v51  ;;  %1955 = vmatpush1.msra.mxu0 %v3310_v8 }
 0x368   :  { %1492 = vmatprep.mubr.f32.mxu1 %v5423_v35  ;;  %1539 = vmatprep.subr.mxu1 %v1343_v13 }
 0x369   :  { %1729 = vmatprep.mubr.f32.mxu0 %v5423_v35  ;;  %1956 = vmatprep.subr.mxu0 %v3309_v3 }
 0x36a   :  { %3241 = vmatmul.mubr.msk.f32.gmra.mxu1 %vm1394_vm6, %v1392_v14  ;;  %3275 = vmatmul.mubr.msk.f32.gmra.mxu0 %vm1394_vm6, %v1631_v5  ;;  %v1770_v14 = vsel %vm1767_vm8, %v1768_v20, %v1769_v40 }
 0x36b   :  { %1540 = vmatpush1.msra.mxu1 %v1342_v9  ;;  %1957 = vmatpush1.msra.mxu0 %v3308_v34 }
 0x36c   :  { %1541 = vmatprep.subr.mxu1 %v1341_v28  ;;  %1958 = vmatprep.subr.mxu0 %v3307_v38 }
 0x36d   :  { %1542 = vmatpush1.msra.mxu1 %v1340_v31  ;;  %1959 = vmatpush1.msra.mxu0 %v3306_v60 }
 0x36e   :  { %1543 = vmatprep.subr.mxu1 %v1339_v25  ;;  %1960 = vmatprep.subr.mxu0 %v3305_v36 }
 0x36f   :  { %1544 = vmatpush1.msra.mxu1 %v1338_v39  ;;  %1577 = vmatprep.mubr.f32.mxu1 %v5423_v35 }
 0x370   :  { %1961 = vmatpush1.msra.mxu0 %v3304_v19  ;;  %1994 = vmatprep.mubr.f32.mxu0 %v5423_v35 }
 0x371   :  { %3244 = vmatmul.mubr.msk.f32.vlgmr.msra.gmra.mxu1 %vm1394_vm6, %v4666_v61  ;;  %3298 = vmatprep.subr.msk.mxu1 %vm1403_vm4, %v3297_v11 }
 0x372   :  { %3328 = vmatmul.mubr.msk.f32.vlgmr.msra.gmra.mxu0 %vm1394_vm6, %v1911_v44  ;;  %3299 = vmatpush1.msk.msra.mxu1 %vm1403_vm4, %v3296_v46 }
 0x373   :  { %1801 = vmatprep.subr.mxu1 %v3295_v7  ;;  %1583 = vmatprep.mubr.f32.mxu1 %v5423_v35 }
 0x374   :  { %1802 = vmatpush1.msra.mxu1 %v3294_v12  ;;  %2000 = vmatprep.mubr.f32.mxu0 %v5423_v35 }
 0x375   :  { %3245 = vmatmul.mubr.msk.f32.gmra.mxu1 %vm1394_vm6, %v4668_v29  ;;  %1803 = vmatprep.subr.mxu1 %v3293_v30  ;;  %v1771_v29 = vrot.slane %v4688_v58, 3 }
 0x376   :  { %3329 = vmatmul.mubr.msk.f32.gmra.mxu0 %vm1394_vm6, %v1913_v47  ;;  %1804 = vmatpush1.msra.mxu1 %v3292_v23 }
 0x377   :  { %1805 = vmatprep.subr.mxu1 %v3291_v59  ;;  %1589 = vmatprep.mubr.f32.mxu1 %v5423_v35  ;;  %v1772_v5 = vsel %vm1767_vm8, %v1769_v40, %v1771_v29  ;;  %v1774_v61 = vsel %vm1767_vm8, %v1771_v29, %v1773_v63 }
 0x378   :  { %1806 = vmatpush1.msra.mxu1 %v3290_v26  ;;  %2006 = vmatprep.mubr.f32.mxu0 %v5423_v35 }
 0x379   :  { %3246 = vmatmul.mubr.msk.f32.gmra.mxu1 %vm1394_vm6, %v4688_v58  ;;  %1807 = vmatprep.subr.mxu1 %v3289_v16  ;;  %v1336_v58 = vpop.f32.mrf.mxu0  ;;  %v2027_v16 = vld [vmem:[%s5400_s4] sm:$0x3] }
 0x37a   :  { %3330 = vmatmul.mubr.msk.f32.gmra.mxu0 %vm1394_vm6, %v1915_v33  ;;  %1808 = vmatpush1.msra.mxu1 %v3288_v22 }
 0x37b   :  { %1809 = vmatprep.subr.mxu1 %v3287_v32  ;;  %1595 = vmatprep.mubr.f32.mxu1 %v5423_v35 }
 0x37c   :  { %1810 = vmatpush1.msra.mxu1 %v3286_v21  ;;  %2012 = vmatprep.mubr.f32.mxu0 %v5423_v35 }
 0x37d   :  { %3247 = vmatmul.mubr.msk.f32.gmra.mxu1 %vm1394_vm6, %v4717_v62  ;;  %1811 = vmatprep.subr.mxu1 %v3285_v10 }
 0x37e   :  { %3331 = vmatmul.mubr.msk.f32.gmra.mxu0 %vm1394_vm6, %v1914_v48  ;;  %1812 = vmatpush1.msra.mxu1 %v3284_v0 }
 0x37f   :  { %1813 = vmatprep.subr.mxu1 %v3283_v1  ;;  %1853 = vmatprep.mubr.f32.mxu1 %v5423_v35 }
 0x380   :  { %1814 = vmatpush1.msra.mxu1 %v3282_v49 }
 0x381   :  { %1815 = vmatprep.subr.mxu1 %v3281_v18 }
 0x382   :  { %1816 = vmatpush1.msra.mxu1 %v3280_v54  ;;  %v5424_v54 = vsub.s32 0, %v4203_v15 }
 0x383   :  { %1817 = vmatprep.subr.mxu1 %v3279_v37 }
 0x384   :  { %1818 = vmatpush1.msra.mxu1 %v3278_v2  ;;  %v2032_v37 = vrot.slane %v2027_v16, %v5424_v54 }
 0x385   :  { %1819 = vmatprep.subr.mxu1 %v3277_v50 }
 0x386   :  { %1820 = vmatpush1.msra.mxu1 %v3276_v41  ;;  %v2036_v41 = vrot.slane %v2027_v16, %v883_v24 }
 0x387   :  { %3300 = vmatmul.mubr.msk.f32.vlgmr.msra.gmra.mxu1 %vm1394_vm6, %v1770_v14 }
 0x388   :  { %1859 = vmatprep.mubr.f32.mxu1 %v5423_v35 }
 0x38b   :  { %3301 = vmatmul.mubr.msk.f32.gmra.mxu1 %vm1394_vm6, %v1772_v5 }
 0x38c   :  { %1865 = vmatprep.mubr.f32.mxu1 %v5423_v35 }
 0x38f   :  { %3302 = vmatmul.mubr.msk.f32.gmra.mxu1 %vm1394_vm6, %v1774_v61 }
 0x390   :  { %1871 = vmatprep.mubr.f32.mxu1 %v5423_v35 }
 0x393   :  { %3303 = vmatmul.mubr.msk.f32.gmra.mxu1 %vm1394_vm6, %v1773_v63 }
 0x394   :  { %2221 = vmatprep.mubr.f32.mxu1 %v5423_v35 }
 0x414   :  { %v1476_v52 = vpop.f32.mrf.mxu1  ;;  %v1713_v62 = vpop.f32.mrf.mxu0 }
 0x416   :  { %v1478_v4 = vpop.f32.mrf.mxu1  ;;  %v1715_v17 = vpop.f32.mrf.mxu0 }
 0x41a   :  { %v1482_v53 = vpop.f32.mrf.mxu1  ;;  %v1719_v27 = vpop.f32.mrf.mxu0 }
 0x41c   :  { %v1484_v45 = vpop.f32.mrf.mxu1  ;;  %v1721_v51 = vpop.f32.mrf.mxu0 }
 0x424   :  { %v1488_v42 = vpop.f32.mrf.mxu1  ;;  %v1725_v13 = vpop.f32.mrf.mxu0 }
 0x426   :  { %v1490_v6 = vpop.f32.mrf.mxu1  ;;  %v1727_v9 = vpop.f32.mrf.mxu0 }
 0x42a   :  { %v1494_v8 = vpop.f32.mrf.mxu1  ;;  %v1731_v38 = vpop.f32.mrf.mxu0 }
 0x42c   :  { %v1496_v3 = vpop.f32.mrf.mxu1  ;;  %v1733_v25 = vpop.f32.mrf.mxu0 }
 0x431   :  { %v1579_v34 = vpop.f32.mrf.mxu1 }
 0x432   :  { %v1996_v39 = vpop.f32.mrf.mxu0  ;;  %v1580_v33 = vadd.f32 %v1579_v34, %v1476_v52 }
 0x433   :  { %v1581_v28 = vpop.f32.mrf.mxu1 }
 0x434   :  { %v1998_v19 = vpop.f32.mrf.mxu0  ;;  %v1582_v21 = vadd.f32 %v1581_v28, %v1478_v4  ;;  %v1736_v29 = vadd.f32 %v1713_v62, %v1580_v33 }
 0x435   :  { %v1585_v31 = vpop.f32.mrf.mxu1 }
 0x436   :  { %v2002_v55 = vpop.f32.mrf.mxu0  ;;  %v1586_v7 = vadd.f32 %v1585_v31, %v1482_v53  ;;  %v1737_v5 = vadd.f32 %v1715_v17, %v1582_v21 }
 0x437   :  { %v1587_v60 = vpop.f32.mrf.mxu1 }
 0x438   :  { %v2004_v44 = vpop.f32.mrf.mxu0  ;;  %v1588_v56 = vadd.f32 %v1587_v60, %v1484_v45  ;;  %v1738_v23 = vadd.f32 %v1719_v27, %v1586_v7 }
 0x439   :  { %v1591_v36 = vpop.f32.mrf.mxu1 }
 0x43a   :  { %v1592_v59 = vadd.f32 %v1591_v36, %v1488_v42  ;;  %v2008_v47 = vpop.f32.mrf.mxu0  ;;  %v1739_v32 = vadd.f32 %v1721_v51, %v1588_v56 }
 0x43b   :  { %v1593_v57 = vpop.f32.mrf.mxu1 }
 0x43c   :  { %v1594_v48 = vadd.f32 %v1593_v57, %v1490_v6  ;;  %v2010_v18 = vpop.f32.mrf.mxu0  ;;  %v1740_v2 = vadd.f32 %v1725_v13, %v1592_v59 }
 0x43d   :  { %v1597_v11 = vpop.f32.mrf.mxu1 }
 0x43e   :  { %v1598_v0 = vadd.f32 %v1597_v11, %v1494_v8  ;;  %v1741_v14 = vadd.f32 %v1727_v9, %v1594_v48  ;;  %v2014_v53 = vpop.f32.mrf.mxu0 }
 0x43f   :  { %v1599_v46 = vpop.f32.mrf.mxu1 }
 0x440   :  { %v1600_v50 = vadd.f32 %v1599_v46, %v1496_v3  ;;  %v1742_v4 = vadd.f32 %v1731_v38, %v1598_v0  ;;  %v2016_v28 = vpop.f32.mrf.mxu0 }
 0x442   :  { %v1743_v13 = vadd.f32 %v1733_v25, %v1600_v50 }
 0x447   :  { %v1855_v12 = vpop.f32.mrf.mxu1 }
 0x448   :  { %v1878_v45 = vadd.f32 %v1855_v12, %v1736_v29 }
 0x449   :  { %v1857_v30 = vpop.f32.mrf.mxu1 }
 0x44a   :  { %v1879_v42 = vadd.f32 %v1857_v30, %v1737_v5  ;;  %v2019_v31 = vadd.f32 %v1996_v39, %v1878_v45 }
 0x44b   :  { %v1861_v26 = vpop.f32.mrf.mxu1 }
 0x44c   :  { %v1880_v22 = vadd.f32 %v1861_v26, %v1738_v23  ;;  %v2020_v60 = vadd.f32 %v1998_v19, %v1879_v42  ;;  %v2039_v56 = vadd.f32 %v2032_v37, %v2019_v31  ;;  %v2249_v31 = vld [vmem:[%s5404_s8 + $0x48] sm:$0xff] }
 0x44d   :  { %v1863_v10 = vpop.f32.mrf.mxu1 }
 0x44e   :  { %v2021_v1 = vadd.f32 %v2002_v55, %v1880_v22  ;;  %v1881_v49 = vadd.f32 %v1863_v10, %v1739_v32  ;;  %v2040_v30 = vadd.f32 %v2036_v41, %v2020_v60  ;;  %v2047_v22 = vmax.f32 %v2039_v56, 0.0  ;;  %v2248_v60 = vld [vmem:[%s5404_s8 + $0x40] sm:$0xff]  ;;  %v2139_v56 = vld [vmem:[%s5403_s7 + $0x10] sm:$0x3] }
 0x44f   :  { %v1867_v40 = vpop.f32.mrf.mxu1 }
 0x450   :  { %v2022_v20 = vadd.f32 %v2004_v44, %v1881_v49  ;;  %v2041_v63 = vadd.f32 %v2032_v37, %v2021_v1  ;;  %v1882_v61 = vadd.f32 %v1867_v40, %v1740_v2  ;;  %v2048_v32 = vmax.f32 %v2040_v30, 0.0  ;;  %v2257_v30 = vld [vmem:[%s5404_s8 + $0x88] sm:$0xff] }
 0x451   :  { %v1869_v43 = vpop.f32.mrf.mxu1  ;;  %v2063_v0 = vrot.slane %v2047_v22, 1 }
 0x452   :  { %v2042_v58 = vadd.f32 %v2036_v41, %v2022_v20  ;;  %v1883_v52 = vadd.f32 %v1869_v43, %v1741_v14  ;;  %v2023_v27 = vadd.f32 %v2008_v47, %v1882_v61  ;;  %v2049_v15 = vmax.f32 %v2041_v63, 0.0 }
 0x453   :  { %v1873_v6 = vpop.f32.mrf.mxu1  ;;  %v2066_v1 = vrot.slane %v2048_v32, 1 }
 0x454   :  { %v2024_v51 = vadd.f32 %v2010_v18, %v1883_v52  ;;  %v1884_v8 = vadd.f32 %v1873_v6, %v1742_v4  ;;  %v2043_v24 = vadd.f32 %v2032_v37, %v2023_v27  ;;  %v2050_v9 = vmax.f32 %v2042_v58, 0.0 }
 0x455   :  { %v1875_v3 = vpop.f32.mrf.mxu1  ;;  %v2064_v55 = vrot.slane %v2049_v15, 1 }
 0x456   :  { %v2044_v62 = vadd.f32 %v2036_v41, %v2024_v51  ;;  %v2025_v17 = vadd.f32 %v2014_v53, %v1884_v8  ;;  %v1885_v34 = vadd.f32 %v1875_v3, %v1743_v13  ;;  %v2051_v36 = vmax.f32 %v2043_v24, 0.0  ;;  %v2255_v24 = vld [vmem:[%s5404_s8 + $0x78] sm:$0xff]  ;;  %v2254_v3 = vld [vmem:[%s5404_s8 + $0x70] sm:$0xff] }
 0x457   :  { %v2067_v7 = vrot.slane %v2050_v9, 1  ;;  %v2065_v54 = vsel %vm935_vm1, %v2063_v0, %v2064_v55 }
 0x458   :  { %v2052_v38 = vmax.f32 %v2044_v62, 0.0  ;;  %v2045_v57 = vadd.f32 %v2032_v37, %v2025_v17  ;;  %v2026_v11 = vadd.f32 %v2016_v28, %v1885_v34  ;;  %v2069_v46 = vrot.slane %v2051_v36, 1  ;;  %v2253_v62 = vld [vmem:[%s5404_s8 + $0x68] sm:$0xff]  ;;  %v2252_v17 = vld [vmem:[%s5404_s8 + $0x60] sm:$0xff]  ;;  %v2251_v34 = vld [vmem:[%s5404_s8 + $0x58] sm:$0xff] }
 0x459   :  { %v2068_v37 = vsel %vm935_vm1, %v2066_v1, %v2067_v7  ;;  %v2085_v2 = vmax.f32 %v2047_v22, %v2065_v54  ;;  %v2250_v28 = vld [vmem:[%s5404_s8 + $0x50] sm:$0xff] }
 0x45a   :  { %v2071_v44 = vrot.slane %v2052_v38, 1  ;;  %v2053_v12 = vmax.f32 %v2045_v57, 0.0  ;;  %v2046_v25 = vadd.f32 %v2036_v41, %v2026_v11  ;;  %v2070_v23 = vsel %vm935_vm1, %v2064_v55, %v2069_v46  ;;  %v2245_v57 = vld [vmem:[%s5404_s8 + $0x28] sm:$0xff]  ;;  %v2244_v11 = vld [vmem:[%s5404_s8 + $0x20] sm:$0xff]  ;;  %v2243_v55 = vld [vmem:[%s5404_s8 + $0x18] sm:$0xff] }
 0x45b   :  { %v2087_v47 = vmax.f32 %v2049_v15, %v2070_v23  ;;  %v2086_v40 = vmax.f32 %v2048_v32, %v2068_v37  ;;  %v2137_v15 = vld [vmem:[%s5403_s7] sm:$0xff]  ;;  %v3361_v1 = vld [vmem:[%s5406_s10 + $0xd0] sm:$0xff] }
 0x45c   :  { %v2054_v59 = vmax.f32 %v2046_v25, 0.0  ;;  %v2072_v26 = vsel %vm935_vm1, %v2067_v7, %v2071_v44  ;;  %v2073_v39 = vrot.slane %v2053_v12, 1  ;;  %v2241_v7 = vld [vmem:[%s5404_s8 + $0x8] sm:$0xff]  ;;  %v2258_v25 = vld [vmem:[%s5404_s8 + $0x90] sm:$0xff]  ;;  %v2256_v23 = vld [vmem:[%s5404_s8 + $0x80] sm:$0xff] }
 0x45d   :  { %v2088_v19 = vmax.f32 %v2050_v9, %v2072_v26  ;;  %2105 = vrot.lane.b32.xlu0 %v2087_v47, %s3735_s2  ;;  %v2138_v9 = vld [vmem:[%s5403_s7 + $0x8] sm:$0xff]  ;;  %v3349_v26 = vld [vmem:[%s5406_s10 + $0x90] sm:$0xff] }
 0x45e   :  { %v2091_v48 = vmax.f32 %v2053_v12, %v2073_v39  ;;  %v2075_v16 = vrot.slane %v2054_v59, 1  ;;  %v2074_v21 = vsel %vm935_vm1, %v2069_v46, %v2073_v39  ;;  %v2242_v46 = vld [vmem:[%s5404_s8 + $0x10] sm:$0xff]  ;;  %v2259_v12 = vld [vmem:[%s5404_s8 + $0x98] sm:$0x7f]  ;;  %v3348_v39 = vld [vmem:[%s5406_s10 + $0x88] sm:$0xff] }
 0x45f   :  { %2107 = vrot.lane.b32.xlu1 %v2088_v19, %s3735_s2  ;;  %v2089_v49 = vmax.f32 %v2051_v36, %v2074_v21  ;;  %v2247_v36 = vld [vmem:[%s5404_s8 + $0x38] sm:$0xff] }
 0x460   :  { %v2092_v33 = vmax.f32 %v2054_v59, %v2075_v16  ;;  %v2076_v10 = vsel %vm935_vm1, %v2071_v44, %v2075_v16  ;;  %v2240_v44 = vld [vmem:[%s5404_s8] sm:$0xff]  ;;  %v3350_v59 = vld [vmem:[%s5406_s10 + $0x98] sm:$0xff]  ;;  %v3345_v16 = vld [vmem:[%s5406_s10 + $0x70] sm:$0xff] }
 0x461   :  { %2113 = vrot.lane.b32.xlu0 %v2091_v48, %s3735_s2  ;;  %v2090_v18 = vmax.f32 %v2052_v38, %v2076_v10  ;;  %v2246_v38 = vld [vmem:[%s5404_s8 + $0x30] sm:$0xff]  ;;  %3493 = vmatprep.subr.mxu0 %v3350_v59  ;;  %v3362_v10 = vld [vmem:[%s5406_s10 + $0xd8] sm:$0xff] }
 0x462   :  { %3494 = vmatpush3.msra.mxu0 %v3350_v59 }
 0x463   :  { %2115 = vrot.lane.b32.xlu1 %v2092_v33, %s3735_s2  ;;  %3495 = vmatprep.subr.mxu0 %v3349_v26 }
 0x464   :  { %3496 = vmatpush3.msra.mxu0 %v3349_v26  ;;  %v3373_v26 = vld [vmem:[%s5406_s10 + $0x120] sm:$0xff] }
 0x465   :  { %2109 = vrot.lane.b32.xlu0 %v2089_v49, %s3735_s2  ;;  %3497 = vmatprep.subr.mxu0 %v3348_v39 }
 0x466   :  { %3498 = vmatpush3.msra.mxu0 %v3348_v39  ;;  %v3372_v39 = vld [vmem:[%s5406_s10 + $0x118] sm:$0xff] }
 0x467   :  { %2111 = vrot.lane.b32.xlu1 %v2090_v18, %s3735_s2 }
 0x469   :  { %2101 = vrot.lane.b32.xlu0 %v2085_v2, %s3735_s2 }
 0x46b   :  { %2103 = vrot.lane.b32.xlu1 %v2086_v40, %s3735_s2 }
 0x4cf   :  { %v2106_v50 = vpop.permute.xlu0 %2105 }
 0x4d1   :  { %v2108_v41 = vpop.permute.xlu1 %2107 }
 0x4d2   :  { %v2118_v58 = vsel %vm1046_vm2, %v2106_v50, %v2108_v41  ;;  %v2132_v45 = vmax.f32 %v2088_v19, %v2108_v41  ;;  %v3347_v19 = vld [vmem:[%s5406_s10 + $0x80] sm:$0xff]  ;;  %v3357_v41 = vld [vmem:[%s5406_s10 + $0xb0] sm:$0xff] }
 0x4d3   :  { %v2114_v20 = vpop.permute.xlu0 %2113  ;;  %v2131_v42 = vmax.f32 %v2087_v47, %v2118_v58  ;;  %v3364_v47 = vld [vmem:[%s5406_s10 + $0xe8] sm:$0xff]  ;;  %3499 = vmatprep.subr.mxu0 %v3347_v19  ;;  %v3343_v50 = vld [vmem:[%s5406_s10 + $0x60] sm:$0xff] }
 0x4d4   :  { %3500 = vmatpush3.msra.mxu0 %v3347_v19  ;;  %v3371_v19 = vld [vmem:[%s5406_s10 + $0x110] sm:$0xff] }
 0x4d5   :  { %v2116_v14 = vpop.permute.xlu1 %2115 }
 0x4d6   :  { %v2120_v29 = vsel %vm1046_vm2, %v2114_v20, %v2116_v14  ;;  %v2136_v5 = vmax.f32 %v2092_v33, %v2116_v14  ;;  %v3363_v33 = vld [vmem:[%s5406_s10 + $0xe0] sm:$0xff]  ;;  %v3342_v20 = vld [vmem:[%s5406_s10 + $0x58] sm:$0xff]  ;;  %v3356_v14 = vld [vmem:[%s5406_s10 + $0xa8] sm:$0xff] }
 0x4d7   :  { %v2135_v63 = vmax.f32 %v2091_v48, %v2120_v29  ;;  %v2110_v61 = vpop.permute.xlu0 %2109  ;;  %v3346_v48 = vld [vmem:[%s5406_s10 + $0x78] sm:$0xff]  ;;  %v3341_v29 = vld [vmem:[%s5406_s10 + $0x50] sm:$0xff] }
 0x4d8   :  { %3332 = vmatprep.subr.msk.mxu1 %vm2150_vm9, %v2136_v5  ;;  %3501 = vmatprep.subr.mxu0 %v3346_v48  ;;  %v3355_v5 = vld [vmem:[%s5406_s10 + $0xa0] sm:$0xff] }
 0x4d9   :  { %3333 = vmatpush1.msk.msra.mxu1 %vm2150_vm9, %v2135_v63  ;;  %v2112_v43 = vpop.permute.xlu1 %2111  ;;  %3502 = vmatpush3.msra.mxu0 %v3346_v48  ;;  %v2361_v63 = vld [vmem:[%s5406_s10 + $0x48] sm:$0xff] }
 0x4da   :  { %v2119_v52 = vsel %vm1046_vm2, %v2110_v61, %v2112_v43  ;;  %v2134_v4 = vmax.f32 %v2090_v18, %v2112_v43  ;;  %3503 = vmatprep.subr.mxu0 %v3345_v16  ;;  %v3359_v18 = vld [vmem:[%s5406_s10 + $0xc0] sm:$0xff]  ;;  %v3388_v61 = vld [vmem:[%s5406_s10 + $0x188] sm:$0xff] }
 0x4db   :  { %v2133_v53 = vmax.f32 %v2089_v49, %v2119_v52  ;;  %v2102_v27 = vpop.permute.xlu0 %2101  ;;  %3504 = vmatpush3.msra.mxu0 %v3345_v16  ;;  %v3360_v49 = vld [vmem:[%s5406_s10 + $0xc8] sm:$0xff]  ;;  %v3369_v16 = vld [vmem:[%s5406_s10 + $0x100] sm:$0xff] }
 0x4dc   :  { %2183 = vmatprep.subr.mxu1 %v2134_v4  ;;  %v3370_v48 = vld [vmem:[%s5406_s10 + $0x108] sm:$0xff] }
 0x4dd   :  { %2184 = vmatpush1.msra.mxu1 %v2133_v53  ;;  %v2104_v6 = vpop.permute.xlu1 %2103 }
 0x4de   :  { %v2117_v51 = vsel %vm1046_vm2, %v2102_v27, %v2104_v6  ;;  %v2130_v8 = vmax.f32 %v2086_v40, %v2104_v6  ;;  %2185 = vmatprep.subr.mxu1 %v2132_v45  ;;  %v3358_v40 = vld [vmem:[%s5406_s10 + $0xb8] sm:$0xff] }
 0x4df   :  { %v2129_v13 = vmax.f32 %v2085_v2, %v2117_v51  ;;  %2186 = vmatpush1.msra.mxu1 %v2131_v42  ;;  %v3344_v2 = vld [vmem:[%s5406_s10 + $0x68] sm:$0xff] }
 0x4e0   :  { %2187 = vmatprep.subr.mxu1 %v2130_v8  ;;  %3505 = vmatprep.subr.mxu0 %v3344_v2  ;;  %v2360_v8 = vld [vmem:[%s5406_s10 + $0x40] sm:$0xff] }
 0x4e1   :  { %2188 = vmatpush1.msra.mxu1 %v2129_v13  ;;  %3506 = vmatpush3.msra.mxu0 %v3344_v2  ;;  %v3387_v13 = vld [vmem:[%s5406_s10 + $0x180] sm:$0xff] }
 0x4e2   :  { %3334 = vmatmul.mubr.msk.f32.vlgmr.msra.gmra.mxu1 %vm2140_vm10, %v2137_v15  ;;  %2273 = vmatprep.subr.mxu1 %v5423_v35  ;;  %v2359_v15 = vld [vmem:[%s5406_s10 + $0x38] sm:$0xff] }
 0x4e3   :  { %2227 = vmatprep.mubr.f32.mxu1 %v5423_v35  ;;  %2274 = vmatpush1.msra.mxu1 %v2255_v24  ;;  %v3386_v24 = vld [vmem:[%s5406_s10 + $0x178] sm:$0xff] }
 0x4e4   :  { %2275 = vmatprep.subr.mxu1 %v5423_v35  ;;  %3507 = vmatprep.subr.mxu0 %v3343_v50 }
 0x4e5   :  { %2276 = vmatpush1.msra.mxu1 %v2254_v3  ;;  %3508 = vmatpush3.msra.mxu0 %v3343_v50  ;;  %v2358_v3 = vld [vmem:[%s5406_s10 + $0x30] sm:$0xff] }
 0x4e6   :  { %3335 = vmatmul.mubr.msk.f32.gmra.mxu1 %vm2140_vm10, %v2138_v9  ;;  %2277 = vmatprep.subr.mxu1 %v5423_v35 }
 0x4e7   :  { %2278 = vmatpush1.msra.mxu1 %v2253_v62  ;;  %2233 = vmatprep.mubr.f32.mxu1 %v5423_v35  ;;  %v3385_v62 = vld [vmem:[%s5406_s10 + $0x170] sm:$0xff] }
 0x4e8   :  { %2279 = vmatprep.subr.mxu1 %v5423_v35  ;;  %3509 = vmatprep.subr.mxu0 %v3342_v20 }
 0x4e9   :  { %2280 = vmatpush1.msra.mxu1 %v2252_v17  ;;  %3510 = vmatpush3.msra.mxu0 %v3342_v20 }
 0x4ea   :  { %2281 = vmatprep.subr.mxu1 %v5423_v35  ;;  %3336 = vmatmul.mubr.msk.f32.gmra.mxu1 %vm2140_vm10, %v2139_v56 }
 0x4eb   :  { %2282 = vmatpush1.msra.mxu1 %v2251_v34  ;;  %3511 = vmatprep.subr.mxu0 %v3341_v29  ;;  %v2357_v34 = vld [vmem:[%s5406_s10 + $0x28] sm:$0xff] }
 0x4ec   :  { %2283 = vmatprep.subr.mxu1 %v5423_v35  ;;  %3512 = vmatpush3.msra.mxu0 %v3341_v29  ;;  %v3391_v29 = vld [vmem:[%s5407_s11] ss:$0 sm:$0xff] }
 0x4ed   :  { %2284 = vmatpush1.msra.mxu1 %v2250_v28  ;;  %3516 = vmatprep.subr.mxu0 %v2361_v63  ;;  %v3384_v28 = vld [vmem:[%s5406_s10 + $0x168] sm:$0xff] }
 0x4ee   :  { %2285 = vmatprep.subr.mxu1 %v5423_v35 }
 0x4ef   :  { %2286 = vmatpush1.msra.mxu1 %v2249_v31 }
 0x4f0   :  { %2287 = vmatprep.subr.mxu1 %v5423_v35 }
 0x4f1   :  { %2288 = vmatpush1.msra.mxu1 %v2248_v60  ;;  %v2356_v60 = vld [vmem:[%s5406_s10 + $0x20] sm:$0xff] }
 0x4f2   :  { %2289 = vmatprep.subr.mxu1 %v5423_v35 }
 0x4f3   :  { %2290 = vmatpush1.msra.mxu1 %v2247_v36  ;;  %v3383_v36 = vld [vmem:[%s5406_s10 + $0x160] sm:$0xff] }
 0x4f4   :  { %2291 = vmatprep.subr.mxu1 %v5423_v35 }
 0x4f5   :  { %2292 = vmatpush1.msra.mxu1 %v2246_v38  ;;  %v2355_v38 = vld [vmem:[%s5406_s10 + $0x18] sm:$0xff] }
 0x4f6   :  { %2293 = vmatprep.subr.mxu1 %v5423_v35 }
 0x4f7   :  { %2294 = vmatpush1.msra.mxu1 %v2245_v57  ;;  %v3382_v57 = vld [vmem:[%s5406_s10 + $0x158] sm:$0xff] }
 0x4f8   :  { %2295 = vmatprep.subr.mxu1 %v5423_v35 }
 0x4f9   :  { %2296 = vmatpush1.msra.mxu1 %v2244_v11  ;;  %v2354_v11 = vld [vmem:[%s5406_s10 + $0x10] sm:$0xff] }
 0x4fa   :  { %2297 = vmatprep.subr.mxu1 %v5423_v35 }
 0x4fb   :  { %2298 = vmatpush1.msra.mxu1 %v2243_v55  ;;  %v3381_v55 = vld [vmem:[%s5406_s10 + $0x150] sm:$0xff] }
 0x4fc   :  { %2299 = vmatprep.subr.mxu1 %v5423_v35 }
 0x4fd   :  { %2300 = vmatpush1.msra.mxu1 %v2242_v46  ;;  %v2353_v46 = vld [vmem:[%s5406_s10 + $0x8] sm:$0xff] }
 0x4fe   :  { %2301 = vmatprep.subr.mxu1 %v5423_v35 }
 0x4ff   :  { %2302 = vmatpush1.msra.mxu1 %v2241_v7  ;;  %v3380_v7 = vld [vmem:[%s5406_s10 + $0x148] sm:$0xff] }
 0x500   :  { %2303 = vmatprep.subr.mxu1 %v5423_v35 }
 0x501   :  { %2304 = vmatpush1.msra.mxu1 %v2240_v44  ;;  %v2352_v44 = vld [vmem:[%s5406_s10] sm:$0xff] }
 0x502   :  { %2329 = vmatprep.subr.mxu1 %v5423_v35 }
 0x503   :  { %3337 = vmatpush2.msk.msra.mxu1 %vm935_vm1, %v2259_v12  ;;  %v3379_v12 = vld [vmem:[%s5406_s10 + $0x140] sm:$0xff] }
 0x504   :  { %2331 = vmatprep.subr.mxu1 %v5423_v35 }
 0x505   :  { %2332 = vmatpush2.msra.mxu1 %v2258_v25  ;;  %v3376_v25 = vld [vmem:[%s5406_s10 + $0x138] sm:$0xff] }
 0x506   :  { %2333 = vmatprep.subr.mxu1 %v5423_v35 }
 0x507   :  { %2334 = vmatpush2.msra.mxu1 %v2257_v30 }
 0x508   :  { %2335 = vmatprep.subr.mxu1 %v5423_v35 }
 0x509   :  { %2336 = vmatpush2.msra.mxu1 %v2256_v23  ;;  %v3375_v23 = vld [vmem:[%s5406_s10 + $0x130] sm:$0xff] }
 0x50a   :  { %3539 = vmatprep.subr.mxu1 %v3364_v47 }
 0x5a2   :  { %v2223_v22 = vpop.f32.mrf.mxu1 }
 0x5a4   :  { %v2225_v32 = vpop.f32.mrf.mxu1 }
 0x5a5   :  { %3338 = vmatprep.mubr.msk.f32.mxu1 %vm2260_vm11, %v2225_v32  ;;  %v3367_v32 = vld [vmem:[%s5406_s10 + $0xf0] sm:$0xff] }
 0x5a6   :  { %v2229_v21 = vpop.f32.mrf.mxu1  ;;  %2338 = vmatmul.mubr.f32.vlgmr.msra.gmra.mxu1 %v2223_v22  ;;  %v3368_v22 = vld [vmem:[%s5406_s10 + $0xf8] sm:$0xff] }
 0x5a7   :  { %3540 = vmatpush3.msra.mxu1 %v3364_v47  ;;  %v3374_v47 = vld [vmem:[%s5406_s10 + $0x128] sm:$0xff] }
 0x5a8   :  { %v2231_v0 = vpop.f32.mrf.mxu1  ;;  %3541 = vmatprep.subr.mxu1 %v3363_v33 }
 0x5a9   :  { %3339 = vmatprep.mubr.msk.f32.mxu1 %vm2260_vm11, %v2231_v0  ;;  %3542 = vmatpush3.msra.mxu1 %v3363_v33 }
 0x5aa   :  { %2343 = vmatmul.mubr.f32.gmra.mxu1 %v2229_v21  ;;  %3543 = vmatprep.subr.mxu1 %v3362_v10  ;;  %v2235_v54 = vpop.f32.mrf.mxu1 }
 0x5ab   :  { %3544 = vmatpush3.msra.mxu1 %v3362_v10 }
 0x5ac   :  { %3545 = vmatprep.subr.mxu1 %v3361_v1  ;;  %v2237_v37 = vpop.f32.mrf.mxu1 }
 0x5ad   :  { %3546 = vmatpush3.msra.mxu1 %v3361_v1  ;;  %3340 = vmatprep.mubr.msk.f32.mxu1 %vm2260_vm11, %v2237_v37 }
 0x5ae   :  { %3547 = vmatprep.subr.mxu1 %v3360_v49  ;;  %2348 = vmatmul.mubr.f32.gmra.mxu1 %v2235_v54 }
 0x5af   :  { %3548 = vmatpush3.msra.mxu1 %v3360_v49 }
 0x5b0   :  { %3549 = vmatprep.subr.mxu1 %v3359_v18 }
 0x5b1   :  { %3550 = vmatpush3.msra.mxu1 %v3359_v18 }
 0x5b2   :  { %3551 = vmatprep.subr.mxu1 %v3358_v40 }
 0x5b3   :  { %3552 = vmatpush3.msra.mxu1 %v3358_v40 }
 0x5b4   :  { %3553 = vmatprep.subr.mxu1 %v3357_v41 }
 0x5b5   :  { %3554 = vmatpush3.msra.mxu1 %v3357_v41 }
 0x5b6   :  { %3555 = vmatprep.subr.mxu1 %v3356_v14 }
 0x5b7   :  { %3556 = vmatpush3.msra.mxu1 %v3356_v14 }
 0x5b8   :  { %3557 = vmatprep.subr.mxu1 %v3355_v5 }
 0x5b9   :  { %3558 = vmatpush3.msra.mxu1 %v3355_v5 }
 0x5ba   :  { %3585 = vmatprep.subr.mxu1 %v3388_v61 }
 0x666   :  { %v5130_v43 = vpop.f32.mrf.mxu1 }
 0x667   :  { %v2375_v4 = vrot.slane %v5130_v43, 1  ;;  %v2548_v45 = vrot.slane %v5130_v43, 2  ;;  %v2738_v17 = vrot.slane %v5130_v43, 4  ;;  %v2643_v30 = vrot.slane %v5130_v43, 3 }
 0x668   :  { %v2341_v58 = vpop.f32.mrf.mxu1 }
 0x66a   :  { %v5132_v52 = vpop.f32.mrf.mxu1 }
 0x66b   :  { %v2376_v53 = vrot.slane %v5132_v52, 1  ;;  %v2549_v42 = vrot.slane %v5132_v52, 2  ;;  %v2739_v9 = vrot.slane %v5132_v52, 4  ;;  %v2644_v56 = vrot.slane %v5132_v52, 3 }
 0x66c   :  { %v2346_v27 = vpop.f32.mrf.mxu1 }
 0x66d   :  { %v2377_v6 = vsel %vm935_vm1, %v2375_v4, %v2376_v53  ;;  %v2550_v51 = vsel %vm1625_vm7, %v2548_v45, %v2549_v42  ;;  %v2740_v31 = vsel %vm1403_vm4, %v2738_v17, %v2739_v9  ;;  %v2645_v59 = vsel %vm1767_vm8, %v2643_v30, %v2644_v56  ;;  %v2928_v27 = vld [vmem:[%s5408_s12 + $0x78] sm:$0xff]  ;;  %v2918_v17 = vld [vmem:[%s5408_s12 + $0x28] sm:$0xff] }
 0x66e   :  { %3513 = vmatprep.mubr.msk.f32.mxu0 %vm2378_vm12, %v2377_v6  ;;  %3559 = vmatprep.mubr.msk.f32.mxu1 %vm2378_vm12, %v2550_v51  ;;  %v2349_v33 = vpop.f32.mrf.mxu1  ;;  %v2927_v6 = vld [vmem:[%s5408_s12 + $0x70] sm:$0xff]  ;;  %v2926_v51 = vld [vmem:[%s5408_s12 + $0x68] sm:$0xff] }
 0x66f   :  { %3514 = vmatmul.mubr.msk.f32.vlgmr.msra.gmra.mxu0 %vm2378_vm12, %v2376_v53  ;;  %3560 = vmatmul.mubr.msk.f32.vlgmr.msra.gmra.mxu1 %vm2378_vm12, %v2549_v42  ;;  %v2833_v42 = vld [vmem:[%s5405_s9] sm:$0x3]  ;;  %v3012_v30 = vld [vmem:[%s5410_s14 + $0x28] sm:$0xff] }
 0x670   :  { %3517 = vmatpush3.msra.mxu0 %v2361_v63  ;;  %3586 = vmatpush3.msra.mxu1 %v3388_v61  ;;  %v2350_v21 = vpop.f32.mrf.mxu1 }
 0x671   :  { %3518 = vmatprep.subr.mxu0 %v2360_v8  ;;  %3587 = vmatprep.subr.mxu1 %v3387_v13 }
 0x672   :  { %3519 = vmatpush3.msra.mxu0 %v2360_v8  ;;  %3588 = vmatpush3.msra.mxu1 %v3387_v13  ;;  %v2925_v8 = vld [vmem:[%s5408_s12 + $0x60] sm:$0xff]  ;;  %v2924_v13 = vld [vmem:[%s5408_s12 + $0x58] sm:$0xff] }
 0x673   :  { %3520 = vmatprep.subr.mxu0 %v2359_v15  ;;  %3536 = vmatprep.mubr.msk.f32.mxu0 %vm2378_vm12, %v5130_v43 }
 0x674   :  { %3589 = vmatprep.subr.mxu1 %v3386_v24  ;;  %3521 = vmatpush3.msra.mxu0 %v2359_v15  ;;  %v2923_v15 = vld [vmem:[%s5408_s12 + $0x50] sm:$0xff] }
 0x675   :  { %3590 = vmatpush3.msra.mxu1 %v3386_v24  ;;  %3522 = vmatprep.subr.mxu0 %v2358_v3  ;;  %v2922_v24 = vld [vmem:[%s5408_s12 + $0x48] sm:$0xff] }
 0x676   :  { %3591 = vmatprep.subr.mxu1 %v3385_v62  ;;  %3523 = vmatpush3.msra.mxu0 %v2358_v3  ;;  %v2921_v3 = vld [vmem:[%s5408_s12 + $0x40] sm:$0xff] }
 0x677   :  { %3592 = vmatpush3.msra.mxu1 %v3385_v62  ;;  %3605 = vmatprep.mubr.msk.f32.mxu1 %vm2378_vm12, %v2740_v31  ;;  %v2919_v62 = vld [vmem:[%s5408_s12 + $0x30] sm:$0xff] }
 0x678   :  { %3524 = vmatprep.subr.mxu0 %v2357_v34  ;;  %3593 = vmatprep.subr.mxu1 %v3384_v28  ;;  %v2915_v31 = vld [vmem:[%s5408_s12 + $0x10] sm:$0xff] }
 0x679   :  { %3525 = vmatpush3.msra.mxu0 %v2357_v34  ;;  %3594 = vmatpush3.msra.mxu1 %v3384_v28  ;;  %v2917_v34 = vld [vmem:[%s5408_s12 + $0x20] sm:$0xff]  ;;  %v2916_v28 = vld [vmem:[%s5408_s12 + $0x18] sm:$0xff] }
 0x67a   :  { %3526 = vmatprep.subr.mxu0 %v2356_v60  ;;  %3595 = vmatprep.subr.mxu1 %v3383_v36 }
 0x67b   :  { %3527 = vmatpush3.msra.mxu0 %v2356_v60  ;;  %3596 = vmatpush3.msra.mxu1 %v3383_v36  ;;  %v2914_v60 = vld [vmem:[%s5408_s12 + $0x8] sm:$0xff]  ;;  %v2913_v36 = vld [vmem:[%s5408_s12] sm:$0xff] }
 0x67c   :  { %3528 = vmatprep.subr.mxu0 %v2355_v38  ;;  %3597 = vmatprep.subr.mxu1 %v3382_v57 }
 0x67d   :  { %3529 = vmatpush3.msra.mxu0 %v2355_v38  ;;  %3598 = vmatpush3.msra.mxu1 %v3382_v57  ;;  %v3022_v38 = vld [vmem:[%s5410_s14 + $0x78] sm:$0xff]  ;;  %v3021_v57 = vld [vmem:[%s5410_s14 + $0x70] sm:$0xff] }
 0x67e   :  { %3530 = vmatprep.subr.mxu0 %v2354_v11  ;;  %3599 = vmatprep.subr.mxu1 %v3381_v55 }
 0x67f   :  { %3531 = vmatpush3.msra.mxu0 %v2354_v11  ;;  %3600 = vmatpush3.msra.mxu1 %v3381_v55  ;;  %v3020_v11 = vld [vmem:[%s5410_s14 + $0x68] sm:$0xff]  ;;  %v3019_v55 = vld [vmem:[%s5410_s14 + $0x60] sm:$0xff] }
 0x680   :  { %3532 = vmatprep.subr.mxu0 %v2353_v46  ;;  %3601 = vmatprep.subr.mxu1 %v3380_v7 }
 0x681   :  { %3533 = vmatpush3.msra.mxu0 %v2353_v46  ;;  %3602 = vmatpush3.msra.mxu1 %v3380_v7  ;;  %v3018_v46 = vld [vmem:[%s5410_s14 + $0x58] sm:$0xff]  ;;  %v3017_v7 = vld [vmem:[%s5410_s14 + $0x50] sm:$0xff] }
 0x682   :  { %3534 = vmatprep.subr.mxu0 %v2352_v44  ;;  %3603 = vmatprep.subr.mxu1 %v3379_v12 }
 0x683   :  { %3535 = vmatpush3.msra.mxu0 %v2352_v44  ;;  %3604 = vmatpush3.msra.mxu1 %v3379_v12  ;;  %v3016_v44 = vld [vmem:[%s5410_s14 + $0x48] sm:$0xff]  ;;  %v3015_v12 = vld [vmem:[%s5410_s14 + $0x40] sm:$0xff] }
 0x684   :  { %3537 = vmatmul.mubr.msk.f32.vlgmr.msra.gmra.mxu0 %vm2378_vm12, %v5132_v52  ;;  %3562 = vmatprep.subr.mxu0 %v3376_v25 }
 0x685   :  { %3606 = vmatmul.mubr.msk.f32.vlgmr.msra.gmra.mxu1 %vm2378_vm12, %v2739_v9  ;;  %3563 = vmatpush3.msra.mxu0 %v3376_v25  ;;  %v2920_v9 = vld [vmem:[%s5408_s12 + $0x38] sm:$0xff] }
 0x686   :  { %3582 = vmatprep.mubr.msk.f32.mxu0 %vm2378_vm12, %v2645_v59  ;;  %3564 = vmatprep.subr.mxu0 %v3375_v23  ;;  %v3014_v25 = vld [vmem:[%s5410_s14 + $0x38] sm:$0xff] }
 0x687   :  { %3565 = vmatpush3.msra.mxu0 %v3375_v23  ;;  %3650 = vmatprep.subr.mxu1 %v5423_v35  ;;  %v3011_v23 = vld [vmem:[%s5410_s14 + $0x20] sm:$0xff]  ;;  %v3010_v59 = vld [vmem:[%s5410_s14 + $0x18] sm:$0xff] }
 0x688   :  { %3566 = vmatprep.subr.mxu0 %v3374_v47  ;;  %3682 = vmatprep.mubr.msk.f32.mxu1 %vm3736_vm13, %v5423_v35 }
 0x689   :  { %3567 = vmatpush3.msra.mxu0 %v3374_v47  ;;  %3651 = vmatpush3.msra.mxu1 %v3022_v38 }
 0x68a   :  { %3568 = vmatprep.subr.mxu0 %v3373_v26  ;;  %3652 = vmatprep.subr.mxu1 %v5423_v35 }
 0x68b   :  { %3569 = vmatpush3.msra.mxu0 %v3373_v26  ;;  %3653 = vmatpush3.msra.mxu1 %v3021_v57 }
 0x68c   :  { %3570 = vmatprep.subr.mxu0 %v3372_v39  ;;  %3654 = vmatprep.subr.mxu1 %v5423_v35 }
 0x68d   :  { %3571 = vmatpush3.msra.mxu0 %v3372_v39  ;;  %3655 = vmatpush3.msra.mxu1 %v3020_v11  ;;  %v3009_v39 = vld [vmem:[%s5410_s14 + $0x10] sm:$0xff] }
 0x68e   :  { %3572 = vmatprep.subr.mxu0 %v3371_v19  ;;  %3656 = vmatprep.subr.mxu1 %v5423_v35 }
 0x68f   :  { %3573 = vmatpush3.msra.mxu0 %v3371_v19  ;;  %3657 = vmatpush3.msra.mxu1 %v3019_v55  ;;  %v3008_v19 = vld [vmem:[%s5410_s14 + $0x8] sm:$0xff] }
 0x690   :  { %3574 = vmatprep.subr.mxu0 %v3370_v48  ;;  %3658 = vmatprep.subr.mxu1 %v5423_v35 }
 0x691   :  { %3575 = vmatpush3.msra.mxu0 %v3370_v48  ;;  %3659 = vmatpush3.msra.mxu1 %v3018_v46  ;;  %v3007_v48 = vld [vmem:[%s5410_s14] sm:$0xff] }
 0x692   :  { %3576 = vmatprep.subr.mxu0 %v3369_v16  ;;  %3660 = vmatprep.subr.mxu1 %v5423_v35 }
 0x693   :  { %3577 = vmatpush3.msra.mxu0 %v3369_v16  ;;  %3661 = vmatpush3.msra.mxu1 %v3017_v7  ;;  %v3394_v16 = vld [vmem:[%s5409_s13] ss:$0 sm:$0xff] }
 0x694   :  { %3578 = vmatprep.subr.mxu0 %v3368_v22  ;;  %3662 = vmatprep.subr.mxu1 %v5423_v35 }
 0x695   :  { %3579 = vmatpush3.msra.mxu0 %v3368_v22  ;;  %3663 = vmatpush3.msra.mxu1 %v3016_v44 }
 0x696   :  { %3580 = vmatprep.subr.mxu0 %v3367_v32  ;;  %3664 = vmatprep.subr.mxu1 %v5423_v35 }
 0x697   :  { %3581 = vmatpush3.msra.mxu0 %v3367_v32  ;;  %3665 = vmatpush3.msra.mxu1 %v3015_v12 }
 0x698   :  { %3583 = vmatmul.mubr.msk.f32.vlgmr.msra.gmra.mxu0 %vm2378_vm12, %v2644_v56  ;;  %3608 = vmatprep.subr.mxu0 %v5423_v35  ;;  %v3013_v56 = vld [vmem:[%s5410_s14 + $0x30] sm:$0xff] }
 0x699   :  { %3612 = vmatprep.mubr.msk.f32.mxu0 %vm3736_vm13, %v5423_v35  ;;  %3666 = vmatprep.subr.mxu1 %v5423_v35 }
 0x69a   :  { %3667 = vmatpush3.msra.mxu1 %v3014_v25 }
 0x69b   :  { %3668 = vmatprep.subr.mxu1 %v5423_v35 }
 0x69c   :  { %3669 = vmatpush3.msra.mxu1 %v3013_v56 }
 0x69d   :  { %3670 = vmatprep.subr.mxu1 %v5423_v35 }
 0x69e   :  { %3671 = vmatpush3.msra.mxu1 %v3012_v30 }
 0x69f   :  { %3672 = vmatprep.subr.mxu1 %v5423_v35 }
 0x6a0   :  { %3673 = vmatpush3.msra.mxu1 %v3011_v23 }
 0x6a1   :  { %3674 = vmatprep.subr.mxu1 %v5423_v35 }
 0x6a2   :  { %3675 = vmatpush3.msra.mxu1 %v3010_v59 }
 0x6a3   :  { %3676 = vmatprep.subr.mxu1 %v5423_v35 }
 0x6a4   :  { %3677 = vmatpush3.msra.mxu1 %v3009_v39 }
 0x6a5   :  { %3678 = vmatprep.subr.mxu1 %v5423_v35 }
 0x6a6   :  { %3679 = vmatpush3.msra.mxu1 %v3008_v19 }
 0x6a7   :  { %3680 = vmatprep.subr.mxu1 %v5423_v35 }
 0x6a8   :  { %3681 = vmatpush3.msra.mxu1 %v3007_v48 }
 0x72f   :  { %v3515_v10 = vpop.f32.mrf.mxu0  ;;  %v3561_v49 = vpop.f32.mrf.mxu1 }
 0x731   :  { %v2449_v0 = vpop.f32.mrf.mxu0  ;;  %v2621_v2 = vpop.f32.mrf.mxu1 }
 0x744   :  { %v3538_v1 = vpop.f32.mrf.mxu0 }
 0x745   :  { %v2534_v54 = vadd.f32 %v3538_v1, %v3515_v10  ;;  %v3607_v50 = vpop.f32.mrf.mxu1 }
 0x746   :  { %v2528_v18 = vpop.f32.mrf.mxu0 }
 0x747   :  { %v2529_v37 = vadd.f32 %v2528_v18, %v2449_v0  ;;  %v2631_v40 = vadd.f32 %v3561_v49, %v2534_v54  ;;  %v2811_v43 = vpop.f32.mrf.mxu1 }
 0x749   :  { %v2630_v14 = vadd.f32 %v2621_v2, %v2529_v37 }
 0x758   :  { %v3584_v41 = vpop.f32.mrf.mxu0 }
 0x759   :  { %v2726_v20 = vadd.f32 %v3584_v41, %v2631_v40 }
 0x75a   :  { %v2716_v5 = vpop.f32.mrf.mxu0 }
 0x75b   :  { %v2821_v63 = vadd.f32 %v3607_v50, %v2726_v20  ;;  %v2725_v61 = vadd.f32 %v2716_v5, %v2630_v14 }
 0x75d   :  { %v2830_v58 = vadd.f32 %v3391_v29, %v2821_v63  ;;  %v2820_v52 = vadd.f32 %v2811_v43, %v2725_v61 }
 0x75f   :  { %v2832_v4 = vmax.f32 %v2830_v58, 0.0  ;;  %v2829_v53 = vadd.f32 %v3391_v29, %v2820_v52 }
 0x761   :  { %v2831_v45 = vmax.f32 %v2829_v53, 0.0  ;;  %3609 = vmatpush3.msk.msra.mxu0 %vm2838_vm14, %v2832_v4 }
 0x762   :  { %3610 = vmatprep.subr.mxu0 %v5423_v35 }
 0x763   :  { %3611 = vmatpush3.msra.mxu0 %v2831_v45 }
 0x764   :  { %3613 = vmatmul.mubr.msk.f32.vlgmr.msra.gmra.mxu0 %vm2834_vm15, %v2833_v42  ;;  %3615 = vmatprep.subr.mxu0 %v5423_v35 }
 0x765   :  { %3616 = vmatpush3.msra.mxu0 %v2928_v27  ;;  %3647 = vmatprep.mubr.msk.f32.mxu0 %vm3736_vm13, %v5423_v35 }
 0x766   :  { %3617 = vmatprep.subr.mxu0 %v5423_v35 }
 0x767   :  { %3618 = vmatpush3.msra.mxu0 %v2927_v6 }
 0x768   :  { %3619 = vmatprep.subr.mxu0 %v5423_v35 }
 0x769   :  { %3620 = vmatpush3.msra.mxu0 %v2926_v51 }
 0x76a   :  { %3621 = vmatprep.subr.mxu0 %v5423_v35 }
 0x76b   :  { %3622 = vmatpush3.msra.mxu0 %v2925_v8 }
 0x76c   :  { %3623 = vmatprep.subr.mxu0 %v5423_v35 }
 0x76d   :  { %3624 = vmatpush3.msra.mxu0 %v2924_v13 }
 0x76e   :  { %3625 = vmatprep.subr.mxu0 %v5423_v35 }
 0x76f   :  { %3626 = vmatpush3.msra.mxu0 %v2923_v15 }
 0x770   :  { %3627 = vmatprep.subr.mxu0 %v5423_v35 }
 0x771   :  { %3628 = vmatpush3.msra.mxu0 %v2922_v24 }
 0x772   :  { %3629 = vmatprep.subr.mxu0 %v5423_v35 }
 0x773   :  { %3630 = vmatpush3.msra.mxu0 %v2921_v3 }
 0x774   :  { %3631 = vmatprep.subr.mxu0 %v5423_v35 }
 0x775   :  { %3632 = vmatpush3.msra.mxu0 %v2920_v9 }
 0x776   :  { %3633 = vmatprep.subr.mxu0 %v5423_v35 }
 0x777   :  { %3634 = vmatpush3.msra.mxu0 %v2919_v62 }
 0x778   :  { %3635 = vmatprep.subr.mxu0 %v5423_v35 }
 0x779   :  { %3636 = vmatpush3.msra.mxu0 %v2918_v17 }
 0x77a   :  { %3637 = vmatprep.subr.mxu0 %v5423_v35 }
 0x77b   :  { %3638 = vmatpush3.msra.mxu0 %v2917_v34 }
 0x77c   :  { %3639 = vmatprep.subr.mxu0 %v5423_v35 }
 0x77d   :  { %3640 = vmatpush3.msra.mxu0 %v2916_v28 }
 0x77e   :  { %3641 = vmatprep.subr.mxu0 %v5423_v35 }
 0x77f   :  { %3642 = vmatpush3.msra.mxu0 %v2915_v31 }
 0x780   :  { %3643 = vmatprep.subr.mxu0 %v5423_v35 }
 0x781   :  { %3644 = vmatpush3.msra.mxu0 %v2914_v60 }
 0x782   :  { %3645 = vmatprep.subr.mxu0 %v5423_v35 }
 0x783   :  { %3646 = vmatpush3.msra.mxu0 %v2913_v36 }
 0x824   :  { %v2908_v47 = vpop.f32.mrf.mxu0 }
 0x825   :  { %2912 = vst [vmem:[#allocation4] sm:$0x3] %v2908_v47  ;;  %3648 = vmatmul.mubr.f32.vlgmr.msra.gmra.mxu0 %v2908_v47 }
 0x826   :  { %v3614_v26 = vpop.f32.mrf.mxu0 }
 0x8e5   :  { %v3002_v22 = vpop.f32.mrf.mxu0 }
 0x8e6   :  { %v3003_v32 = vadd.f32 %v3394_v16, %v3002_v22 }
 0x8e7   :  { %v3649_v33 = vpop.f32.mrf.mxu0 }
 0x8e8   :  { %v3006_v21 = vmax.f32 %v3003_v32, 0.0 }
 0x8ea   :  { %3683 = vmatmul.mubr.f32.vlgmr.msra.gmra.mxu1 %v3006_v21 }
 0x8eb   :  { %3701 = shalt.err (!%p3698_p4)
}
 0x8ec   :  { %3120 = dma.vmem_to_hbm [thread:$0]  %s3118_s26, 32, %s5413_s17, [#allocation5]   ;;  %v3395_v35 = vld [vmem:[%s5411_s15] ss:$0 sm:$0xff] }
 0x8ed   :  { %s3738_s27 = smov [#allocation2]  }
 0x8ee   :  { %s3107_s28 = sshll.u32 %s3738_s27, 4  ;;  %s3108_s28 = int_to_ptr.vmem [resolvable:$true] %s3107_s28 }
 0x8ef   :  { %s3710_s10 = scalar_lea.vmem %s3108_s28, 32  ;;  %p3715_p6 = scmp.lt.s32.totalorder %s3108_s28, %s3108_s28 }
 0x8f0   :  { %p3711_p5 = scmp.ne.s32.totalorder %s3108_s28, %s3710_s10  ;;  %p3716_p7 = scmp.lt.s32.totalorder %s3710_s10, %s3710_s10 }
 0x8f2   :  { %p3717_p8 = por %p3716_p7, %p3715_p6 }
 0x8f4   :  { %p3718_p9 = pnand %p3717_p8, %p3711_p5 }
 0x9aa   :  { %v3096_v10 = vpop.f32.mrf.mxu1 }
 0x9ab   :  { %v3097_v0 = vadd.f32 %v3395_v35, %v3096_v10 }
 0x9ac   :  { %v3684_v1 = vpop.f32.mrf.mxu1 }
 0x9ad   :  { %3100 = vst [vmem:[#allocation2] sm:$0x3] %v3097_v0 }
 0x9ae   :  { %3721 = shalt.err (!%p3718_p9)
}
 0x9af   :  { %3110 = dma.vmem_to_hbm [thread:$0]  %s3108_s28, 32, %s5412_s16, [#allocation3]  }
 0x9b0   :  { %3730 = dma.done.wait [#allocation3], 32  }
 0x9b1   :  { %3731 = vsyncadd [#allocation3], 4294967264 }
 0x9b2   :  { %3732 = dma.done.wait [#allocation5], 32  }
 0x9b3   :  { %3733 = vsyncadd [#allocation5], 4294967264 }
 0x9b4   :  { %3127 = vsyncpa [#allocation3], 1 }
 0x9b5   :  { %3128 = vsyncpa [#allocation5], 1 }

</bundles_post_ra>
